<compile_context>
chip_gen: v6e
topology: v6e:2x2x1
jax: 0.10.0
libtpu: 0.0.40
codegen_flags: <defaults>
</compile_context>

<pallas_src>
import numpy as np
import jax
import jax.numpy as jnp
from jax.experimental import pallas as pl
from jax.experimental.pallas import tpu as pltpu

_HI = jax.lax.Precision.HIGHEST


def _make_kernel(head_pad):
    def kernel(x_ref,        # (TB, Me)            f32 marker values
               expw_ref,     # (Me, Me*H)          kron(I_Me, wval), MXU dtype
               ppflat_ref,   # (1, Me*H)           (pe @ wpos + btok) flattened, f32
               pool_ref,     # (Me*H, H)            right-side mean-pool matrix, MXU dtype
               wenc_ref,     # (H, E)
               benc_ref,     # (1, E)               f32
               wbig_ref,     # (E, head_pad + Md*H) fused [wmu | wmu@wpred | 0 | tile(wmu@wz)]
               bbig_ref,     # (1, head_pad + Md*H) f32
               pdflat_ref,   # (1, Md*H)            (pd @ wp + bd) flattened, f32
               wblk_ref,     # (Md*H, RECON_PAD)    kron(I_Md, wout^T) zero-padded to 128 lanes
               bout_ref,     # (1, RECON_PAD)       f32
               out_ref):     # (TB, head_pad + RECON_PAD)  packed [z | pred | pad || recon | pad]
        f32 = jnp.float32
        mmt = expw_ref.dtype                       # MXU operand dtype (bf16); VPU math in f32

        # ---------------- encoder ----------------
        # lane-dense token embeddings: (x @ kron(I_Me, wval))[b, m*H+j] = x[b,m] * wval[j]
        xw = jnp.dot(x_ref[...].astype(mmt), expw_ref[...], preferred_element_type=f32)
        h = jnp.maximum(xw + ppflat_ref[...], 0.0)                         # (TB, Me*H) f32
        # mean over markers as a TB-independent right-side MXU contraction
        pooled = jnp.dot(h.astype(mmt), pool_ref[...], preferred_element_type=f32)  # (TB, H)
        enc = jnp.maximum(
            jnp.dot(pooled.astype(mmt), wenc_ref[...], preferred_element_type=f32)
            + benc_ref[...], 0.0)                                          # (TB, E)

        # ------- fused fc_mu + pred_head + decoder z-projection (one MXU call) -------
        fused = jnp.dot(enc.astype(mmt), wbig_ref[...],
                        preferred_element_type=f32) + bbig_ref[...]        # (TB, head_pad+Md*H)

        # ---------------- decoder ----------------
        hd = jnp.maximum(fused[:, head_pad:] + pdflat_ref[...], 0.0)       # (TB, Md*H)
        recon = jnp.dot(hd.astype(mmt), wblk_ref[...],
                        preferred_element_type=f32) + bout_ref[...]        # (TB, RECON_PAD)

        # two 128-aligned, lane-dense stores into the packed output slab
        out_ref[:, :head_pad] = fused[:, :head_pad]
        out_ref[:, head_pad:] = recon
    return kernel


def fate_masked_ae_forward(x, marker_idx_encoder, marker_idx_decoder, params, *,
                           tb=128, mm_dtype=jnp.bfloat16):
    """Returns (z, reconstruction, prediction) like FATEMaskedAE.forward.

    tb:       batch tile (multiple of 128 for v5e; 256 also good on v6e/v7x).
    mm_dtype: MXU operand dtype (bf16 on all generations; elementwise math stays f32).
    """
    f32 = jnp.float32
    x = x.astype(f32)

    # gather of positional encodings == self.pos_encoding[idx] (glue, plain JAX)
    pos = params["pos_encoding"]
    pe = pos[marker_idx_encoder]                         # (Me, P)
    pd = pos[marker_idx_decoder]                         # (Md, P)

    B, Me = x.shape
    Md = pd.shape[0]
    H = params["wval"].shape[1]
    E = params["wenc"].shape[1]
    L = params["wmu"].shape[1]
    C = params["wpred"].shape[1]

    HEAD = L + C
    HEAD_PAD = ((HEAD + 127) // 128) * 128               # 128-aligned [z|pred] segment
    RECON_PAD = ((Md + 127) // 128) * 128                # 128-aligned recon segment
    W1 = HEAD_PAD + Md * H                               # fused matmul output width
    WOUT = HEAD_PAD + RECON_PAD                          # packed, lane-dense output slab

    # ----- batch tiling: big TB, but keep >=2 grid steps so both v7x cores get work -----
    TB = int(tb)
    if B > 8:
        TB = min(TB, ((B + 1) // 2 + 7) // 8 * 8)
    TB = max(TB, 8)
    Bp = (B + TB - 1) // TB * TB
    if Bp != B:
        x = jnp.pad(x, ((0, Bp - B), (0, 0)))

    # ----- batch-independent precomputation, hoisted out of the kernel -----
    wval, wpos, btok = params["wval"], params["wpos"], params["btok"]
    wenc, benc = params["wenc"], params["benc"]
    wmu, bmu = params["wmu"], params["bmu"]
    wz, bd = params["wz"], params["bd"]
    wpred, bpred = params["wpred"], params["bpred"]
    wout, bout = params["wout"], params["bout"]

    # token stage: (x @ expand_w)[b, m*H+j] = x[b, m] * wval[j]; positional term broadcast
    expand_w = jnp.kron(jnp.eye(Me, dtype=f32), wval)                       # (Me, Me*H)
    ppflat = (jnp.dot(pe, wpos, precision=_HI) + btok).reshape(1, Me * H)   # (1, Me*H)
    # TB-independent right-side mean-pool matrix (replaces the TB^2-scaling selector)
    pool = jnp.kron(jnp.full((Me, 1), 1.0 / Me, f32), jnp.eye(H, dtype=f32))  # (Me*H, H)

    wmu_wz = jnp.dot(wmu, wz, precision=_HI)                                # (E, H)
    wmu_wpred = jnp.dot(wmu, wpred, precision=_HI)                          # (E, C)
    bmu_wz = jnp.dot(bmu, wz, precision=_HI)                                # (1, H)
    bmu_wpred = jnp.dot(bmu, wpred, precision=_HI) + bpred                  # (1, C)

    # TODO(synk): wbig replicates wmu@wz across Md; if Md or H grows, compute zh = enc@(wmu@wz)
    # once in the kernel and lane-replicate instead of widening the fused matmul to O(Md*H).
    wbig = jnp.zeros((E, W1), f32)
    wbig = wbig.at[:, :L].set(wmu)
    wbig = wbig.at[:, L:HEAD].set(wmu_wpred)
    wbig = wbig.at[:, HEAD_PAD:].set(jnp.tile(wmu_wz, (1, Md)))
    bbig = jnp.zeros((1, W1), f32)
    bbig = bbig.at[:, :L].set(bmu)
    bbig = bbig.at[:, L:HEAD].set(bmu_wpred)
    bbig = bbig.at[:, HEAD_PAD:].set(jnp.tile(bmu_wz, (1, Md)))

    pdflat = (jnp.dot(pd, params["wp"], precision=_HI) + bd).reshape(1, Md * H)
    # block-diagonal readout padded to a full 128-lane segment (unmasked store)
    wblk = jnp.zeros((Md * H, RECON_PAD), f32)
    wblk = wblk.at[:, :Md].set(jnp.kron(jnp.eye(Md, dtype=f32), wout.T))
    bout_pad = jnp.zeros((1, RECON_PAD), f32).at[:, :Md].set(bout[0, 0])

    # bf16 MXU operands (f32 accumulation); biases / broadcast-adds stay f32 (v5e-safe VPU)
    expand_w = expand_w.astype(mm_dtype)
    pool = pool.astype(mm_dtype)
    wenc_mm = wenc.astype(mm_dtype)
    wbig = wbig.astype(mm_dtype)
    wblk = wblk.astype(mm_dtype)

    inputs = (x, expand_w, ppflat, pool, wenc_mm, benc,
              wbig, bbig, pdflat, wblk, bout_pad)

    # whole-array, VMEM-resident constants (constant index_map across the grid)
    # TODO(synk): mark constant weights pipeline_mode=pl.Buffered(1) once single-buffered
    # constants are confirmed supported by the installed runtime (halves their VMEM).
    def _const_spec(a):
        return pl.BlockSpec(a.shape, lambda i: (0, 0))

    in_specs = [pl.BlockSpec((TB, Me), lambda i: (i, 0))] + \
               [_const_spec(a) for a in inputs[1:]]
    out_specs = pl.BlockSpec((TB, WOUT), lambda i: (i, 0))

    # VMEM budget: tile-padded ((8,128) f32 / (16,128) bf16), constants double-buffered
    def _tile_bytes(shape, dtype):
        r, c = shape
        item = jnp.dtype(dtype).itemsize
        sub = 8 * (4 // item)
        return (-(-r // sub) * sub) * (-(-c // 128) * 128) * item

    const_bytes = sum(_tile_bytes(a.shape, a.dtype) for a in inputs[1:])
    stream_bytes = 2 * (_tile_bytes((TB, Me), f32) + _tile_bytes((TB, WOUT), f32))
    tmp_bytes = 4 * TB * (Me * H + H + E + W1 + Md * H + RECON_PAD)
    need = 2 * const_bytes + stream_bytes + tmp_bytes
    try:
        cap = int(pltpu.get_tpu_info().vmem_capacity_bytes)
    except Exception:
        cap = 64 * 2 ** 20                      # v7x per-core VMEM (smallest generation)
    vmem_limit = int(min(cap * 3 // 4, max(16 * 2 ** 20, 4 * need)))

    out = pl.pallas_call(
        _make_kernel(HEAD_PAD),
        out_shape=jax.ShapeDtypeStruct((Bp, WOUT), f32),
        grid_spec=pltpu.PrefetchScalarGridSpec(
            num_scalar_prefetch=0,
            grid=(Bp // TB,),
            in_specs=in_specs,
            out_specs=out_specs,
        ),
        compiler_params=pltpu.CompilerParams(
            dimension_semantics=("parallel",),   # megacore sharding on v7x
            vmem_limit_bytes=vmem_limit,
        ),
    )(*inputs)

    z = out[:B, :L]
    pred = out[:B, L:HEAD]
    recon = out[:B, HEAD_PAD:HEAD_PAD + Md]
    return z, recon, pred


def fate_reference(x, idx_e, idx_d, params):
    """Plain-JAX reference of the same forward (un-fused formulation, f32 HIGHEST)."""
    pe = params["pos_encoding"][idx_e]
    pd = params["pos_encoding"][idx_d]
    h = jnp.maximum(x[:, :, None] * params["wval"][0][None, None, :]
                    + jnp.dot(pe, params["wpos"], precision=_HI)[None, :, :]
                    + params["btok"][0][None, None, :], 0.0)
    pooled = jnp.mean(h, axis=1)
    enc = jnp.maximum(jnp.dot(pooled, params["wenc"], precision=_HI) + params["benc"], 0.0)
    z = jnp.dot(enc, params["wmu"], precision=_HI) + params["bmu"]
    pred = jnp.dot(z, params["wpred"], precision=_HI) + params["bpred"]
    hd = jnp.maximum(jnp.dot(z, params["wz"], precision=_HI)[:, None, :]
                     + jnp.dot(pd, params["wp"], precision=_HI)[None, :, :]
                     + params["bd"][0][None, None, :], 0.0)
    recon = jnp.sum(hd * params["wout"][0][None, None, :], axis=-1) + params["bout"]
    return z, recon, pred


def init_params(key, n_marker, pos_dim, hidden, enc_out, latent, n_cls):
    ks = jax.random.split(key, 12)
    s = lambda k, shape: (jax.random.normal(k, shape, jnp.float32) * 0.1)
    return {
        "pos_encoding": jax.random.normal(ks[0], (n_marker, pos_dim), jnp.float32),
        "wval": s(ks[1], (1, hidden)),
        "wpos": s(ks[2], (pos_dim, hidden)),
        "btok": jnp.zeros((1, hidden), jnp.float32),
        "wenc": s(ks[3], (hidden, enc_out)),
        "benc": jnp.zeros((1, enc_out), jnp.float32),
        "wmu": s(ks[4], (enc_out, latent)),
        "bmu": jnp.zeros((1, latent), jnp.float32),
        "wz": s(ks[5], (latent, hidden)),
        "wp": s(ks[6], (pos_dim, hidden)),
        "bd": jnp.zeros((1, hidden), jnp.float32),
        "wout": s(ks[7], (1, hidden)),
        "bout": jnp.zeros((1, 1), jnp.float32),
        "wpred": s(ks[8], (latent, n_cls)),
        "bpred": jnp.zeros((1, n_cls), jnp.float32),
    }


if __name__ == "__main__":
    # small shapes consistent with the module's forward; B=256 gives two TB=128 grid
    # steps so the pipeline and the v7x megacore split are actually exercised.
    B = 256
    N_MARKER = 16    # total markers (rows of pos_encoding)
    P = 8            # pos_encoding_dim
    H = 32           # token hidden width
    E = 32           # encoder_out_dim
    L = 16           # latent_dim
    C = 4            # pred_head output classes
    M_ENC = 8        # markers visible to encoder
    M_DEC = 8        # markers to reconstruct

    key = jax.random.PRNGKey(0)
    kx, kie, kid, kp = jax.random.split(key, 4)

    x = jax.random.normal(kx, (B, M_ENC), jnp.float32)
    marker_idx_encoder = jax.random.randint(kie, (M_ENC,), 0, N_MARKER)
    marker_idx_decoder = jax.random.randint(kid, (M_DEC,), 0, N_MARKER)
    params = init_params(kp, N_MARKER, P, H, E, L, C)

    z, recon, pred = fate_masked_ae_forward(
        x, marker_idx_encoder, marker_idx_decoder, params, tb=128)
    jax.block_until_ready((z, recon, pred))

    assert z.shape == (B, L) and recon.shape == (B, M_DEC) and pred.shape == (B, C)

    # structural check against a plain-JAX f32 reference (bf16 MXU operands -> loose tol)
    zr, rr, pr = fate_reference(x, marker_idx_encoder, marker_idx_decoder, params)
    np.testing.assert_allclose(np.asarray(z), np.asarray(zr), rtol=5e-2, atol=1e-2)
    np.testing.assert_allclose(np.asarray(recon), np.asarray(rr), rtol=5e-2, atol=1e-2)
    np.testing.assert_allclose(np.asarray(pred), np.asarray(pr), rtol=5e-2, atol=1e-2)

    # TODO(synk): `ae_loss` (the injected loss_ftn call) is not part of the forward hot path.
    print("KERNEL_OK")
</pallas_src>

<mosaic_0001>
module attributes {stable_mosaic.version = 11 : i64} {
  func.func @kernel(%arg0: i32, %arg1: memref<128x8xf32, #tpu.memory_space<vmem>>, %arg2: memref<8x256xbf16, #tpu.memory_space<vmem>>, %arg3: memref<1x256xf32, #tpu.memory_space<vmem>>, %arg4: memref<256x32xbf16, #tpu.memory_space<vmem>>, %arg5: memref<32x32xbf16, #tpu.memory_space<vmem>>, %arg6: memref<1x32xf32, #tpu.memory_space<vmem>>, %arg7: memref<32x384xbf16, #tpu.memory_space<vmem>>, %arg8: memref<1x384xf32, #tpu.memory_space<vmem>>, %arg9: memref<1x256xf32, #tpu.memory_space<vmem>>, %arg10: memref<256x128xbf16, #tpu.memory_space<vmem>>, %arg11: memref<1x128xf32, #tpu.memory_space<vmem>>, %arg12: memref<128x256xf32, #tpu.memory_space<vmem>>) attributes {dimension_semantics = [#tpu.dimension_semantics<parallel>], iteration_bounds = array<i64: 2>, scalar_prefetch = 0 : i64, scratch_operands = 0 : i64, tpu.core_type = #tpu.core_type<tc>, window_params = [{transform_indices = @transform_0, window_bounds = array<i64: 128, 8>}, {pipeline_mode = #tpu.pipeline_mode<synchronous>, transform_indices = @transform_1, window_bounds = array<i64: 8, 256>}, {pipeline_mode = #tpu.pipeline_mode<synchronous>, transform_indices = @transform_2, window_bounds = array<i64: 1, 256>}, {pipeline_mode = #tpu.pipeline_mode<synchronous>, transform_indices = @transform_3, window_bounds = array<i64: 256, 32>}, {pipeline_mode = #tpu.pipeline_mode<synchronous>, transform_indices = @transform_4, window_bounds = array<i64: 32, 32>}, {pipeline_mode = #tpu.pipeline_mode<synchronous>, transform_indices = @transform_5, window_bounds = array<i64: 1, 32>}, {pipeline_mode = #tpu.pipeline_mode<synchronous>, transform_indices = @transform_6, window_bounds = array<i64: 32, 384>}, {pipeline_mode = #tpu.pipeline_mode<synchronous>, transform_indices = @transform_7, window_bounds = array<i64: 1, 384>}, {pipeline_mode = #tpu.pipeline_mode<synchronous>, transform_indices = @transform_8, window_bounds = array<i64: 1, 256>}, {pipeline_mode = #tpu.pipeline_mode<synchronous>, transform_indices = @transform_9, window_bounds = array<i64: 256, 128>}, {pipeline_mode = #tpu.pipeline_mode<synchronous>, transform_indices = @transform_10, window_bounds = array<i64: 1, 128>}, {transform_indices = @transform_11, window_bounds = array<i64: 128, 256>}]} {
    %c0 = arith.constant 0 : index
    %c0_0 = arith.constant 0 : index
    %0 = vector.load %arg1[%c0, %c0_0] : memref<128x8xf32, #tpu.memory_space<vmem>>, vector<128x8xf32>
    %1 = arith.truncf %0 : vector<128x8xf32> to vector<128x8xbf16>
    %c0_1 = arith.constant 0 : index
    %c0_2 = arith.constant 0 : index
    %2 = vector.load %arg2[%c0_1, %c0_2] : memref<8x256xbf16, #tpu.memory_space<vmem>>, vector<8x256xbf16>
    %cst = arith.constant dense<0.000000e+00> : vector<128x256xf32>
    %3 = tpu.matmul %1, %2, %cst {dimension_numbers = #tpu.dot_dimension_numbers<[1], [0], [0], [1], [0, 0, 1, 1], [], []>} : vector<128x8xbf16>, vector<8x256xbf16>, vector<128x256xf32> -> vector<128x256xf32>
    %c0_3 = arith.constant 0 : index
    %c0_4 = arith.constant 0 : index
    %4 = vector.load %arg3[%c0_3, %c0_4] : memref<1x256xf32, #tpu.memory_space<vmem>>, vector<1x256xf32>
    %5 = vector.broadcast %4 : vector<1x256xf32> to vector<128x256xf32>
    %6 = arith.addf %3, %5 : vector<128x256xf32>
    %cst_5 = arith.constant 0.000000e+00 : f32
    %7 = vector.broadcast %cst_5 : f32 to vector<128x256xf32>
    %8 = arith.maximumf %6, %7 : vector<128x256xf32>
    %9 = arith.truncf %8 : vector<128x256xf32> to vector<128x256xbf16>
    %c0_6 = arith.constant 0 : index
    %c0_7 = arith.constant 0 : index
    %10 = vector.load %arg4[%c0_6, %c0_7] : memref<256x32xbf16, #tpu.memory_space<vmem>>, vector<256x32xbf16>
    %cst_8 = arith.constant dense<0.000000e+00> : vector<128x32xf32>
    %11 = tpu.matmul %9, %10, %cst_8 {dimension_numbers = #tpu.dot_dimension_numbers<[1], [0], [0], [1], [0, 0, 1, 1], [], []>} : vector<128x256xbf16>, vector<256x32xbf16>, vector<128x32xf32> -> vector<128x32xf32>
    %12 = arith.truncf %11 : vector<128x32xf32> to vector<128x32xbf16>
    %c0_9 = arith.constant 0 : index
    %c0_10 = arith.constant 0 : index
    %13 = vector.load %arg5[%c0_9, %c0_10] : memref<32x32xbf16, #tpu.memory_space<vmem>>, vector<32x32xbf16>
    %cst_11 = arith.constant dense<0.000000e+00> : vector<128x32xf32>
    %14 = tpu.matmul %12, %13, %cst_11 {dimension_numbers = #tpu.dot_dimension_numbers<[1], [0], [0], [1], [0, 0, 1, 1], [], []>} : vector<128x32xbf16>, vector<32x32xbf16>, vector<128x32xf32> -> vector<128x32xf32>
    %c0_12 = arith.constant 0 : index
    %c0_13 = arith.constant 0 : index
    %15 = vector.load %arg6[%c0_12, %c0_13] : memref<1x32xf32, #tpu.memory_space<vmem>>, vector<1x32xf32>
    %16 = vector.broadcast %15 : vector<1x32xf32> to vector<128x32xf32>
    %17 = arith.addf %14, %16 : vector<128x32xf32>
    %cst_14 = arith.constant 0.000000e+00 : f32
    %18 = vector.broadcast %cst_14 : f32 to vector<128x32xf32>
    %19 = arith.maximumf %17, %18 : vector<128x32xf32>
    %20 = arith.truncf %19 : vector<128x32xf32> to vector<128x32xbf16>
    %c0_15 = arith.constant 0 : index
    %c0_16 = arith.constant 0 : index
    %21 = vector.load %arg7[%c0_15, %c0_16] : memref<32x384xbf16, #tpu.memory_space<vmem>>, vector<32x384xbf16>
    %cst_17 = arith.constant dense<0.000000e+00> : vector<128x384xf32>
    %22 = tpu.matmul %20, %21, %cst_17 {dimension_numbers = #tpu.dot_dimension_numbers<[1], [0], [0], [1], [0, 0, 1, 1], [], []>} : vector<128x32xbf16>, vector<32x384xbf16>, vector<128x384xf32> -> vector<128x384xf32>
    %c0_18 = arith.constant 0 : index
    %c0_19 = arith.constant 0 : index
    %23 = vector.load %arg8[%c0_18, %c0_19] : memref<1x384xf32, #tpu.memory_space<vmem>>, vector<1x384xf32>
    %24 = vector.broadcast %23 : vector<1x384xf32> to vector<128x384xf32>
    %25 = arith.addf %22, %24 : vector<128x384xf32>
    %26 = vector.extract_strided_slice %25 {offsets = [0, 128], sizes = [128, 256], strides = [1, 1]} : vector<128x384xf32> to vector<128x256xf32>
    %c0_20 = arith.constant 0 : index
    %c0_21 = arith.constant 0 : index
    %27 = vector.load %arg9[%c0_20, %c0_21] : memref<1x256xf32, #tpu.memory_space<vmem>>, vector<1x256xf32>
    %28 = vector.broadcast %27 : vector<1x256xf32> to vector<128x256xf32>
    %29 = arith.addf %26, %28 : vector<128x256xf32>
    %cst_22 = arith.constant 0.000000e+00 : f32
    %30 = vector.broadcast %cst_22 : f32 to vector<128x256xf32>
    %31 = arith.maximumf %29, %30 : vector<128x256xf32>
    %32 = arith.truncf %31 : vector<128x256xf32> to vector<128x256xbf16>
    %c0_23 = arith.constant 0 : index
    %c0_24 = arith.constant 0 : index
    %33 = vector.load %arg10[%c0_23, %c0_24] : memref<256x128xbf16, #tpu.memory_space<vmem>>, vector<256x128xbf16>
    %cst_25 = arith.constant dense<0.000000e+00> : vector<128x128xf32>
    %34 = tpu.matmul %32, %33, %cst_25 {dimension_numbers = #tpu.dot_dimension_numbers<[1], [0], [0], [1], [0, 0, 1, 1], [], []>} : vector<128x256xbf16>, vector<256x128xbf16>, vector<128x128xf32> -> vector<128x128xf32>
    %c0_26 = arith.constant 0 : index
    %c0_27 = arith.constant 0 : index
    %35 = vector.load %arg11[%c0_26, %c0_27] : memref<1x128xf32, #tpu.memory_space<vmem>>, vector<1x128xf32>
    %36 = vector.broadcast %35 : vector<1x128xf32> to vector<128x128xf32>
    %37 = arith.addf %34, %36 : vector<128x128xf32>
    %38 = vector.extract_strided_slice %25 {offsets = [0, 0], sizes = [128, 128], strides = [1, 1]} : vector<128x384xf32> to vector<128x128xf32>
    %c0_28 = arith.constant 0 : index
    %c0_29 = arith.constant 0 : index
    %39 = vector.load %arg12[%c0_28, %c0_29] : memref<128x256xf32, #tpu.memory_space<vmem>>, vector<128x128xf32>
    tpu.vector_store %arg12[%c0_28, %c0_29], %38 {strides = array<i32>} : memref<128x256xf32, #tpu.memory_space<vmem>>, vector<128x128xf32>,
    %c0_30 = arith.constant 0 : index
    %c128 = arith.constant 128 : index
    %40 = vector.load %arg12[%c0_30, %c128] : memref<128x256xf32, #tpu.memory_space<vmem>>, vector<128x128xf32>
    tpu.vector_store %arg12[%c0_30, %c128], %37 {strides = array<i32>} : memref<128x256xf32, #tpu.memory_space<vmem>>, vector<128x128xf32>,
    return
  }
  func.func @transform_0(%arg0: i32) -> (i32, i32) {
    %c0_i32 = arith.constant 0 : i32
    %c0_i32_0 = arith.constant 0 : i32
    return %arg0, %c0_i32 : i32, i32
  }
  func.func @transform_1(%arg0: i32) -> (i32, i32) {
    %c0_i32 = arith.constant 0 : i32
    %c0_i32_0 = arith.constant 0 : i32
    %c0_i32_1 = arith.constant 0 : i32
    return %c0_i32, %c0_i32_0 : i32, i32
  }
  func.func @transform_2(%arg0: i32) -> (i32, i32) {
    %c0_i32 = arith.constant 0 : i32
    %c0_i32_0 = arith.constant 0 : i32
    %c0_i32_1 = arith.constant 0 : i32
    return %c0_i32, %c0_i32_0 : i32, i32
  }
  func.func @transform_3(%arg0: i32) -> (i32, i32) {
    %c0_i32 = arith.constant 0 : i32
    %c0_i32_0 = arith.constant 0 : i32
    %c0_i32_1 = arith.constant 0 : i32
    return %c0_i32, %c0_i32_0 : i32, i32
  }
  func.func @transform_4(%arg0: i32) -> (i32, i32) {
    %c0_i32 = arith.constant 0 : i32
    %c0_i32_0 = arith.constant 0 : i32
    %c0_i32_1 = arith.constant 0 : i32
    return %c0_i32, %c0_i32_0 : i32, i32
  }
  func.func @transform_5(%arg0: i32) -> (i32, i32) {
    %c0_i32 = arith.constant 0 : i32
    %c0_i32_0 = arith.constant 0 : i32
    %c0_i32_1 = arith.constant 0 : i32
    return %c0_i32, %c0_i32_0 : i32, i32
  }
  func.func @transform_6(%arg0: i32) -> (i32, i32) {
    %c0_i32 = arith.constant 0 : i32
    %c0_i32_0 = arith.constant 0 : i32
    %c0_i32_1 = arith.constant 0 : i32
    return %c0_i32, %c0_i32_0 : i32, i32
  }
  func.func @transform_7(%arg0: i32) -> (i32, i32) {
    %c0_i32 = arith.constant 0 : i32
    %c0_i32_0 = arith.constant 0 : i32
    %c0_i32_1 = arith.constant 0 : i32
    return %c0_i32, %c0_i32_0 : i32, i32
  }
  func.func @transform_8(%arg0: i32) -> (i32, i32) {
    %c0_i32 = arith.constant 0 : i32
    %c0_i32_0 = arith.constant 0 : i32
    %c0_i32_1 = arith.constant 0 : i32
    return %c0_i32, %c0_i32_0 : i32, i32
  }
  func.func @transform_9(%arg0: i32) -> (i32, i32) {
    %c0_i32 = arith.constant 0 : i32
    %c0_i32_0 = arith.constant 0 : i32
    %c0_i32_1 = arith.constant 0 : i32
    return %c0_i32, %c0_i32_0 : i32, i32
  }
  func.func @transform_10(%arg0: i32) -> (i32, i32) {
    %c0_i32 = arith.constant 0 : i32
    %c0_i32_0 = arith.constant 0 : i32
    %c0_i32_1 = arith.constant 0 : i32
    return %c0_i32, %c0_i32_0 : i32, i32
  }
  func.func @transform_11(%arg0: i32) -> (i32, i32) {
    %c0_i32 = arith.constant 0 : i32
    %c0_i32_0 = arith.constant 0 : i32
    return %arg0, %c0_i32 : i32, i32
  }
}

</mosaic_0001>

<bundles_post_ra>
// kernel: tpu_custom_call.1
= control target key start
LH: loop header
LB: loop body
LE: loop exit
PB: predicated region body
PF: predicated region fallthrough
CT: control target
= control target key end

     0   :  { %s2780_s0 = inlined_call_operand.vmem [shape: f32[256,8], index: 0, kind: input, shape index: {}]   ;;  %s2781_s1 = inlined_call_operand.vmem [shape: bf16[8,256], index: 1, kind: input, shape index: {}]   ;;  %s2782_s2 = inlined_call_operand.vmem [shape: f32[1,256], index: 2, kind: input, shape index: {}]   ;;  %s2783_s3 = inlined_call_operand.vmem [shape: bf16[256,32], index: 3, kind: input, shape index: {}]   ;;  %s2784_s4 = inlined_call_operand.vmem [shape: bf16[32,32], index: 4, kind: input, shape index: {}]   ;;  %s2785_s5 = inlined_call_operand.vmem [shape: f32[1,32], index: 5, kind: input, shape index: {}]   ;;  %s2786_s6 = inlined_call_operand.vmem [shape: bf16[32,384], index: 6, kind: input, shape index: {}]   ;;  %s2787_s7 = inlined_call_operand.vmem [shape: f32[1,384], index: 7, kind: input, shape index: {}]   ;;  %s2788_s8 = inlined_call_operand.vmem [shape: f32[1,256], index: 8, kind: input, shape index: {}]   ;;  %s2789_s9 = inlined_call_operand.vmem [shape: bf16[256,128], index: 9, kind: input, shape index: {}]   ;;  %s2790_s10 = inlined_call_operand.vmem [shape: f32[1,128], index: 10, kind: input, shape index: {}]   ;;  %s2791_s11 = inlined_call_operand.hbm [shape: f32[256,256], index: 11, kind: output, shape index: {}]  }
   0x1   :  { %2792 = sst [smem:[#allocation5_spill]] %s2780_s0 }
   0x2   :  { %16 = vsyncpa [#allocation3], 0 }
   0x3   :  { %18 = vsyncpa [#allocation3 + $0x1], 0  ;;  %s2244_s17 = smov 0   ;;  %s2246_s18 = smov 0  }
   0x4   :  { %s2248_s19 = smov 0   ;;  %s2250_s20 = smov 0  }
   0x5 LB: > { %s2265_s21 = sadd.s32 4294967295, %s2178_s20   ;;  %s1750_s22 = sadd.s32 4294967294, %s2178_s20   ;;  %s2178_s20 = sphi %s2250_s20, %s2799_s20   ;;  %s2174_s19 = sphi %s2248_s19, %s2798_s19   ;;  %s2170_s18 = sphi %s2246_s18, %s2797_s18   ;;  %s2166_s17 = sphi %s2244_s17, %s2796_s17  }
   0x6   : > { %s2269_s23 = sadd.s32 1, %s2178_s20   ;;  %s267_s24 = sadd.s32 1, %s2174_s19 }
   0x7   : > { %s264_s25 = ssub.s32 %s2178_s20, %s2269_s23  ;;  %p277_p0 = scmp.ne.s32.totalorder %s2174_s19, %s2170_s18 }
   0x8   : > { %p265_p1 = scmp.eq.s32.totalorder %s264_s25, 0  ;;  %p278_p2 = scmp.eq.s32.totalorder %s2265_s21, 1 }
   0x9   : > { %p283_p3 = scmp.ne.s32.totalorder %s2170_s18, %s2166_s17  ;;  %p284_p4 = scmp.eq.s32.totalorder %s1750_s22, 1 }
   0xa   : > { %s2280_s26 = scalar_select %p265_p1, %s2174_s19, %s267_s24  }
   0xb   : > { %p2282_p5 = por %p278_p2, %p277_p0  ;;  %p2286_p6 = por %p284_p4, %p283_p3 }
   0xc   : > { %p1753_p7 = scmp.ge.s32.totalorder %s2178_s20, 1  ;;  %p341_p8 = scmp.lt.s32.totalorder %s2178_s20, 3 }
   0xe   : > { %p342_p9 = pnand %p1753_p7, %p341_p8 }
   0xf   : > { %s1755_s12 = sshll.u32 (!%p342_p9), %s2265_s21, 4  ;;  %s2795_s0 = sld [smem:[#allocation5_spill]] (!%p342_p9) }
  0x10   : > { %345 = sbr.rel (%p342_p9) target bundleno = 1132 (0x46c), region = 64  ;;  %p382_p10 = scmp.lt.s32.totalorder (!%p342_p9), %s1755_s12, 31 }
  0x11   : > { %s2181_s29 = smov (!%p342_p9), [#allocation2]  }
  0x12   : > { %s2122_s30 = sshll.u32 (!%p342_p9), %s2181_s29, 4  ;;  %s2123_s30 = int_to_ptr.vmem [resolvable:$false] %s2122_s30 }
  0x15   : > { %v413_v0 = vld [vmem:[%s2781_s1] sm:$0xff]  ;;  %vm456_vm0 = vcmask 1043456   ;;  %v2180_v3 = vmov 0   ;;  %v2076_v4 = vld [vmem:[%s2783_s3 + $0x78] sm:$0xff]   ;;  %s2801_s12 = smov (!%p382_p10, %s1755_s12), 31  ;;  %vm431_vm1 = vcmask 64512   ;;  %v416_v46 = vlaneseq }
  0x16   : > { %v1758_v1 = vcombine.high %v413_v0, %v413_v0  ;;  %v1757_v2 = vcombine.low %v413_v0, %v413_v0  ;;  %495 = vmatprep.mubr.bf16.mxu0 %v2180_v3  ;;  %535 = vmatprep.mubr.bf16.mxu1 %v2180_v3  ;;  %s1756_s15 = sshll.u32 %s2801_s12, 3  ;;  %v2077_v11 = vld [vmem:[%s2783_s3 + $0x38] sm:$0xff]   ;;  %v2078_v15 = vld [vmem:[%s2783_s3 + $0x70] sm:$0xff]   ;;  %v2080_v20 = vld [vmem:[%s2783_s3 + $0x68] sm:$0xff]   ;;  %vm880_vm2 = vcmask 261120   ;;  %s1841_s12 = sshll.u32 %s2265_s21, 12 }
  0x17   : > { %s2304_s24 = scalar_lea.vmem %s2795_s0, %s1756_s15  ;;  %v2079_v16 = vld [vmem:[%s2783_s3 + $0x30] sm:$0xff]   ;;  %v2081_v21 = vld [vmem:[%s2783_s3 + $0x28] sm:$0xff]   ;;  %v2082_v25 = vld [vmem:[%s2783_s3 + $0x60] sm:$0xff]   ;;  %v2384_v47 = vshrl.u32 %v416_v46, 7  ;;  %s2732_s16 = scalar_lea.hbm %s2791_s11, %s1841_s12 }
  0x18   : > { %1759 = vmatprep.subr.msk.bf16.mxu0 %vm456_vm0, %v1758_v1  ;;  %v458_v5 = vsel %vm456_vm0, %v1757_v2, 0  ;;  %2030 = vmatprep.subr.msk.bf16.mxu1 %vm456_vm0, %v1758_v1  ;;  %v389_v6 = vld [vmem:[%s2304_s24] sm:$0xff]  ;;  %v390_v7 = vld [vmem:[%s2304_s24 + $0x8] sm:$0xff]  ;;  %v391_v12 = vld [vmem:[%s2304_s24 + $0x10] sm:$0xff]  ;;  %s2124_s12 = scalar_lea.vmem %s2123_s30, 8192 }
  0x19   : > { %478 = vmatpush1.bf16.msra.mxu0 %v458_v5  ;;  %2031 = vmatpush1.bf16.msra.mxu1 %v458_v5  ;;  %v405_v8 = vpack.c.bf16 %v390_v7, %v389_v6  ;;  %v397_v9 = vld [vmem:[%s2304_s24 + $0x40] sm:$0xff]  ;;  %v398_v10 = vld [vmem:[%s2304_s24 + $0x48] sm:$0xff]  ;;  %v392_v13 = vld [vmem:[%s2304_s24 + $0x18] sm:$0xff]  ;;  %v2387_v48 = vsub.s32 1, %v2384_v47  ;;  %v2390_v49 = vsub.s32 0, %v2384_v47 }
  0x1a   : > { %1842 = vmatprep.subr.bf16.mxu1 %v2076_v4  ;;  %v409_v14 = vpack.c.bf16 %v398_v10, %v397_v9  ;;  %v399_v17 = vld [vmem:[%s2304_s24 + $0x50] sm:$0xff]  ;;  %v406_v18 = vpack.c.bf16 %v392_v13, %v391_v12  ;;  %v400_v19 = vld [vmem:[%s2304_s24 + $0x58] sm:$0xff]  ;;  %v393_v22 = vld [vmem:[%s2304_s24 + $0x20] sm:$0xff] }
  0x1b   : > { %v394_v23 = vld [vmem:[%s2304_s24 + $0x28] sm:$0xff]  ;;  %v410_v24 = vpack.c.bf16 %v400_v19, %v399_v17  ;;  %v401_v26 = vld [vmem:[%s2304_s24 + $0x60] sm:$0xff]  ;;  %v2084_v29 = vld [vmem:[%s2783_s3 + $0x58] sm:$0xff]  }
  0x1c   : > { %1760 = vmatmul.mubr.msk.bf16.vlgmr.msra.gmra.mxu0 %vm431_vm1, %v405_v8  ;;  %1764 = vmatmul.mubr.msk.bf16.vlgmr.msra.gmra.mxu1 %vm431_vm1, %v409_v14  ;;  %v402_v27 = vld [vmem:[%s2304_s24 + $0x68] sm:$0xff]  ;;  %v2083_v28 = vld [vmem:[%s2783_s3 + $0x20] sm:$0xff]   ;;  %v407_v30 = vpack.c.bf16 %v394_v23, %v393_v22  ;;  %v2085_v31 = vld [vmem:[%s2783_s3 + $0x18] sm:$0xff]  }
  0x1d   : > { %505 = vmatprep.mubr.bf16.mxu0 %v2180_v3  ;;  %545 = vmatprep.mubr.bf16.mxu1 %v2180_v3  ;;  %v395_v32 = vld [vmem:[%s2304_s24 + $0x30] sm:$0xff]  ;;  %v396_v33 = vld [vmem:[%s2304_s24 + $0x38] sm:$0xff]  ;;  %v411_v34 = vpack.c.bf16 %v402_v27, %v401_v26  ;;  %v2088_v41 = vld [vmem:[%s2783_s3 + $0x48] sm:$0xff]  }
  0x1e   : > { %1843 = vmatpush3.bf16.msra.mxu1 %v2077_v11  ;;  %v403_v35 = vld [vmem:[%s2304_s24 + $0x70] sm:$0xff]  ;;  %v404_v36 = vld [vmem:[%s2304_s24 + $0x78] sm:$0xff]  ;;  %v408_v37 = vpack.c.bf16 %v396_v33, %v395_v32  ;;  %v2089_v42 = vld [vmem:[%s2783_s3 + $0x8] sm:$0xff]   ;;  %s378_s24 = sand.u32 1, %s2170_s18  }
  0x1f   : > { %1844 = vmatprep.subr.bf16.mxu1 %v2078_v15  ;;  %v412_v38 = vpack.c.bf16 %v404_v36, %v403_v35  ;;  %v2086_v39 = vld [vmem:[%s2783_s3 + $0x50] sm:$0xff]   ;;  %v2090_v43 = vld [vmem:[%s2783_s3 + $0x40] sm:$0xff]   ;;  %v2092_v45 = vld [vmem:[%s2784_s4 + $0x8] sm:$0xff]   ;;  %s1754_s15 = sshll.u32 %s378_s24, 8  ;;  %s2740_s22 = scalar_lea.sflag [#allocation3], %s378_s24 }
  0x20   : > { %v2087_v40 = vld [vmem:[%s2783_s3 + $0x10] sm:$0xff]   ;;  %v2091_v44 = vld [vmem:[%s2783_s3] sm:$0xff]   ;;  %1990 = vmatprep.subr.bf16.mxu0 %v2092_v45  ;;  %s2589_s25 = scalar_lea.vmem [#allocation2], %s1754_s15 }
  0x21   : > { %1991 = vmatpush3.bf16.msra.mxu0 %v2092_v45  ;;  %v414_v50 = vld [vmem:[%s2782_s2] sm:$0x3]  ;;  %s1688_s13 = sshll.u32 %s2589_s25, 4  ;;  %s2734_s13 = int_to_ptr.vmem [resolvable:$true] %s1688_s13 }
  0x22   : > { %1845 = vmatpush3.bf16.msra.mxu1 %v2079_v16  ;;  %v2396_v52 = vrot.slane %v414_v50, %v2387_v48  ;;  %v2399_v53 = vrot.slane %v414_v50, %v2390_v49  ;;  %s2118_s21 = scalar_lea.vmem %s2734_s13, 4096  ;;  %p2125_p0 = scmp.lt.s32.totalorder %s2734_s13, %s2123_s30 }
  0x23   : > { %1846 = vmatprep.subr.bf16.mxu1 %v2080_v20  ;;  %p2119_p11 = scmp.ne.s32.totalorder %s2734_s13, %s2118_s21  ;;  %p2126_p1 = scmp.lt.s32.totalorder %s2124_s12, %s2118_s21 }
  0x24   : > { %1761 = vmatmul.mubr.msk.bf16.gmra.mxu0 %vm431_vm1, %v406_v18  ;;  %1765 = vmatmul.mubr.msk.bf16.gmra.mxu1 %vm431_vm1, %v410_v24 }
  0x25   : > { %515 = vmatprep.mubr.bf16.mxu0 %v2180_v3  ;;  %555 = vmatprep.mubr.bf16.mxu1 %v2180_v3  ;;  %p2120_p12 = pnand %p2119_p11, %p2282_p5  ;;  %p2127_p2 = por %p2126_p1, %p2125_p0 }
  0x26   : > { %1847 = vmatpush3.bf16.msra.mxu1 %v2081_v21 }
  0x27   : > { %1848 = vmatprep.subr.bf16.mxu1 %v2082_v25  ;;  %p2121_p13 = pneg %p2120_p12 }
  0x29   : > { %p2128_p3 = pnand %p2127_p2, %p2121_p13 }
  0x2a   : > { %1849 = vmatpush3.bf16.msra.mxu1 %v2083_v28 }
  0x2b   : > { %1850 = vmatprep.subr.bf16.mxu1 %v2084_v29 }
  0x2c   : > { %1762 = vmatmul.mubr.msk.bf16.gmra.mxu0 %vm431_vm1, %v407_v30  ;;  %1766 = vmatmul.mubr.msk.bf16.gmra.mxu1 %vm431_vm1, %v411_v34 }
  0x2d   : > { %525 = vmatprep.mubr.bf16.mxu0 %v2180_v3  ;;  %565 = vmatprep.mubr.bf16.mxu1 %v2180_v3 }
  0x2e   : > { %1851 = vmatpush3.bf16.msra.mxu1 %v2085_v31 }
  0x2f   : > { %1852 = vmatprep.subr.bf16.mxu1 %v2086_v39 }
  0x32   : > { %1853 = vmatpush3.bf16.msra.mxu1 %v2087_v40 }
  0x33   : > { %1854 = vmatprep.subr.bf16.mxu1 %v2088_v41 }
  0x34   : > { %1763 = vmatmul.mubr.msk.bf16.gmra.mxu0 %vm431_vm1, %v408_v37  ;;  %1767 = vmatmul.mubr.msk.bf16.gmra.mxu1 %vm431_vm1, %v412_v38 }
  0x36   : > { %1855 = vmatpush3.bf16.msra.mxu1 %v2089_v42 }
  0x37   : > { %1856 = vmatprep.subr.bf16.mxu1 %v2090_v43 }
  0x3a   : > { %1857 = vmatpush3.bf16.msra.mxu1 %v2091_v44 }
  0xdc   : > { %v497_v51 = vpop.f32.mrf.mxu0  ;;  %v2401_v55 = vpop.f32.mrf.mxu1 }
  0xdd   : > { %v498_v60 = vadd.f32 %v497_v51, %v2399_v53 }
  0xde   : > { %v499_v54 = vpop.f32.mrf.mxu0  ;;  %v539_v59 = vpop.f32.mrf.mxu1 }
  0xdf   : > { %v500_v57 = vadd.f32 %v499_v54, %v2396_v52  ;;  %v576_v6 = vmax.f32 %v498_v60, 0.0  ;;  %v540_v43 = vadd.f32 %v539_v59, %v2396_v52 }
  0xe0   : > { %v501_v56 = vpop.f32.mrf.mxu0  ;;  %v2407_v63 = vpop.f32.mrf.mxu1 }
  0xe1   : > { %v502_v58 = vadd.f32 %v501_v56, %v2399_v53  ;;  %v577_v2 = vmax.f32 %v500_v57, 0.0 }
  0xe2   : > { %v503_v61 = vpop.f32.mrf.mxu0  ;;  %v543_v5 = vpop.f32.mrf.mxu1 }
  0xe3   : > { %v504_v62 = vadd.f32 %v503_v61, %v2396_v52  ;;  %v578_v0 = vmax.f32 %v502_v58, 0.0  ;;  %v544_v44 = vadd.f32 %v543_v5, %v2396_v52  ;;  %v593_v58 = vmax.f32 %v540_v43, 0.0 }
  0xe4   : > { %v507_v1 = vpop.f32.mrf.mxu0  ;;  %v2409_v9 = vpop.f32.mrf.mxu1 }
  0xe5   : > { %v579_v4 = vmax.f32 %v504_v62, 0.0  ;;  %v608_v10 = vpack.c.bf16 %v578_v0, %v576_v6  ;;  %v508_v15 = vadd.f32 %v507_v1, %v2399_v53  ;;  %v595_v61 = vmax.f32 %v544_v44, 0.0  ;;  %v2094_v44 = vld [vmem:[%s2786_s6 + $0x18] ss:$12 sps:$4 sm:$0xff]  }
  0xe6   : > { %v509_v7 = vpop.f32.mrf.mxu0  ;;  %v549_v14 = vpop.f32.mrf.mxu1 }
  0xe7   : > { %v609_v8 = vpack.c.bf16 %v579_v4, %v577_v2  ;;  %v510_v12 = vadd.f32 %v509_v7, %v2396_v52  ;;  %v580_v24 = vmax.f32 %v508_v15, 0.0  ;;  %v617_v5 = vpack.c.bf16 %v595_v61, %v593_v58 }
  0xe8   : > { %v511_v11 = vpop.f32.mrf.mxu0  ;;  %v2415_v18 = vpop.f32.mrf.mxu1  ;;  %v550_v6 = vadd.f32 %v549_v14, %v2396_v52 }
  0xe9   : > { %v512_v13 = vadd.f32 %v511_v11, %v2399_v53  ;;  %784 = vmatprep.mubr.bf16.mxu1 %v609_v8  ;;  %v581_v21 = vmax.f32 %v510_v12, 0.0  ;;  %v538_v8 = vadd.f32 %v2401_v55, %v2399_v53  ;;  %v542_v11 = vadd.f32 %v2407_v63, %v2399_v53 }
  0xea   : > { %v513_v16 = vpop.f32.mrf.mxu0  ;;  %785 = vmatmul.mubr.bf16.vlgmr.msra.gmra.mxu1 %v608_v10  ;;  %v553_v23 = vpop.f32.mrf.mxu1  ;;  %v548_v55 = vadd.f32 %v2409_v9, %v2399_v53  ;;  %v552_v63 = vadd.f32 %v2415_v18, %v2399_v53 }
  0xeb   : > { %v514_v17 = vadd.f32 %v513_v16, %v2396_v52  ;;  %v582_v19 = vmax.f32 %v512_v13, 0.0  ;;  %v554_v7 = vadd.f32 %v553_v23, %v2396_v52  ;;  %v597_v13 = vmax.f32 %v550_v6, 0.0 }
  0xec   : > { %v517_v20 = vpop.f32.mrf.mxu0  ;;  %v2417_v29 = vpop.f32.mrf.mxu1  ;;  %v592_v16 = vmax.f32 %v538_v8, 0.0 }
  0xed   : > { %v583_v22 = vmax.f32 %v514_v17, 0.0  ;;  %v610_v27 = vpack.c.bf16 %v582_v19, %v580_v24  ;;  %v518_v32 = vadd.f32 %v517_v20, %v2399_v53  ;;  %v599_v15 = vmax.f32 %v554_v7, 0.0  ;;  %v2101_v7 = vld [vmem:[%s2786_s6 + $0x8] ss:$12 sps:$4 sm:$0xff]  }
  0xee   : > { %v519_v25 = vpop.f32.mrf.mxu0  ;;  %v559_v37 = vpop.f32.mrf.mxu1  ;;  %v594_v17 = vmax.f32 %v542_v11, 0.0  ;;  %v558_v9 = vadd.f32 %v2417_v29, %v2399_v53  ;;  %v2093_v29 = vld [vmem:[%s2784_s4] sm:$0xff]  }
  0xef   : > { %v611_v26 = vpack.c.bf16 %v583_v22, %v581_v21  ;;  %v520_v30 = vadd.f32 %v519_v25, %v2396_v52  ;;  %v584_v40 = vmax.f32 %v518_v32, 0.0  ;;  %v619_v20 = vpack.c.bf16 %v599_v15, %v597_v13  ;;  %1992 = vmatprep.subr.bf16.mxu0 %v2093_v29 }
  0xf0   : > { %v521_v28 = vpop.f32.mrf.mxu0  ;;  %v561_v50 = vpop.f32.mrf.mxu1  ;;  %v560_v14 = vadd.f32 %v559_v37, %v2396_v52  ;;  %v616_v22 = vpack.c.bf16 %v594_v17, %v592_v16  ;;  %1993 = vmatpush3.bf16.msra.mxu0 %v2093_v29 }
  0xf1   : > { %v522_v31 = vadd.f32 %v521_v28, %v2399_v53  ;;  %792 = vmatprep.mubr.bf16.mxu1 %v611_v26  ;;  %v585_v38 = vmax.f32 %v520_v30, 0.0  ;;  %v596_v26 = vmax.f32 %v548_v55, 0.0 }
  0xf2   : > { %v523_v33 = vpop.f32.mrf.mxu0  ;;  %793 = vmatmul.mubr.bf16.gmra.mxu1 %v610_v27  ;;  %v563_v59 = vpop.f32.mrf.mxu1  ;;  %v601_v24 = vmax.f32 %v560_v14, 0.0  ;;  %v598_v27 = vmax.f32 %v552_v63, 0.0 }
  0xf3   : > { %v524_v34 = vadd.f32 %v523_v33, %v2396_v52  ;;  %v586_v35 = vmax.f32 %v522_v31, 0.0  ;;  %v564_v21 = vadd.f32 %v563_v59, %v2396_v52 }
  0xf4   : > { %v527_v36 = vpop.f32.mrf.mxu0  ;;  %v567_v12 = vpop.f32.mrf.mxu1  ;;  %v618_v33 = vpack.c.bf16 %v598_v27, %v596_v26 }
  0xf5   : > { %v587_v39 = vmax.f32 %v524_v34, 0.0  ;;  %v612_v45 = vpack.c.bf16 %v586_v35, %v584_v40  ;;  %v528_v56 = vadd.f32 %v527_v36, %v2399_v53  ;;  %v603_v25 = vmax.f32 %v564_v21, 0.0 }
  0xf6   : > { %v529_v41 = vpop.f32.mrf.mxu0  ;;  %v569_v19 = vpop.f32.mrf.mxu1  ;;  %v562_v34 = vadd.f32 %v561_v50, %v2399_v53  ;;  %v600_v36 = vmax.f32 %v558_v9, 0.0  ;;  %v568_v40 = vadd.f32 %v567_v12, %v2399_v53  ;;  %v2098_v50 = vld [vmem:[%s2786_s6] ss:$12 sps:$4 sm:$0xff]  }
  0xf7   : > { %v613_v42 = vpack.c.bf16 %v587_v39, %v585_v38  ;;  %v530_v51 = vadd.f32 %v529_v41, %v2396_v52  ;;  %v588_v2 = vmax.f32 %v528_v56, 0.0  ;;  %v621_v30 = vpack.c.bf16 %v603_v25, %v601_v24 }
  0xf8   : > { %v531_v46 = vpop.f32.mrf.mxu0  ;;  %v571_v23 = vpop.f32.mrf.mxu1  ;;  %v570_v31 = vadd.f32 %v569_v19, %v2396_v52  ;;  %v602_v37 = vmax.f32 %v562_v34, 0.0 }
  0xf9   : > { %v532_v54 = vadd.f32 %v531_v46, %v2399_v53  ;;  %800 = vmatprep.mubr.bf16.mxu1 %v613_v42  ;;  %v589_v0 = vmax.f32 %v530_v51, 0.0  ;;  %v572_v41 = vadd.f32 %v571_v23, %v2399_v53  ;;  %v2096_v53 = vld [vmem:[%s2786_s6 + $0x1c] ss:$12 sps:$4 sm:$0xff]   ;;  %v2100_v46 = vld [vmem:[%s2786_s6 + $0x4] ss:$12 sps:$4 sm:$0xff]  }
  0xfa   : > { %v533_v57 = vpop.f32.mrf.mxu0  ;;  %801 = vmatmul.mubr.bf16.gmra.mxu1 %v612_v45  ;;  %v573_v28 = vpop.f32.mrf.mxu1  ;;  %v605_v18 = vmax.f32 %v570_v31, 0.0  ;;  %v620_v39 = vpack.c.bf16 %v602_v37, %v600_v36  ;;  %v2097_v45 = vld [vmem:[%s2786_s6 + $0x20] ss:$12 sps:$4 sm:$0xff]   ;;  %1119 = vmatprep.subr.bf16.mxu1 %v2096_v53 }
  0xfb   : > { %v534_v60 = vadd.f32 %v533_v57, %v2396_v52  ;;  %v590_v62 = vmax.f32 %v532_v54, 0.0  ;;  %v574_v32 = vadd.f32 %v573_v28, %v2396_v52  ;;  %v604_v52 = vmax.f32 %v568_v40, 0.0  ;;  %2010 = vmatprep.subr.bf16.mxu0 %v2097_v45  ;;  %1120 = vmatpush1.bf16.msra.mxu1 %v2094_v44 }
  0xfc   : > { %v606_v42 = vmax.f32 %v572_v41, 0.0  ;;  %1121 = vmatprep.subr.bf16.mxu1 %v2100_v46 }
  0xfd   : > { %v591_v1 = vmax.f32 %v534_v60, 0.0  ;;  %v614_v10 = vpack.c.bf16 %v590_v62, %v588_v2  ;;  %v607_v35 = vmax.f32 %v574_v32, 0.0 }
  0xfe   : > { %v622_v43 = vpack.c.bf16 %v606_v42, %v604_v52 }
  0xff   : > { %v615_v4 = vpack.c.bf16 %v591_v1, %v589_v0  ;;  %v623_v38 = vpack.c.bf16 %v607_v35, %v605_v18  ;;  %1122 = vmatpush1.bf16.msra.mxu1 %v2098_v50 }
 0x101   : > { %808 = vmatprep.mubr.bf16.mxu1 %v615_v4 }
 0x102   : > { %809 = vmatmul.mubr.bf16.gmra.mxu1 %v614_v10 }
 0x103   : > { %816 = vmatprep.mubr.bf16.mxu1 %v617_v5 }
 0x10a   : > { %817 = vmatmul.mubr.bf16.gmra.mxu1 %v616_v22 }
 0x10b   : > { %824 = vmatprep.mubr.bf16.mxu1 %v619_v20 }
 0x112   : > { %825 = vmatmul.mubr.bf16.gmra.mxu1 %v618_v33 }
 0x113   : > { %832 = vmatprep.mubr.bf16.mxu1 %v621_v30 }
 0x11a   : > { %833 = vmatmul.mubr.bf16.gmra.mxu1 %v620_v39 }
 0x11b   : > { %840 = vmatprep.mubr.bf16.mxu1 %v623_v38 }
 0x122   : > { %841 = vmatmul.mubr.bf16.gmra.mxu1 %v622_v43 }
 0x123   : > { %1139 = vmatprep.mubr.bf16.mxu1 %v2180_v3 }
 0x1aa   : > { %v1858_v51 = vpop.f32.mrf.mxu1 }
 0x1ac   : > { %v1859_v54 = vpop.f32.mrf.mxu1 }
 0x1ad   : > { %v1860_v58 = vadd.f32 %v1859_v54, %v1858_v51  ;;  %v2484_v51 = vld [vmem:[%s2785_s5] ss:$0 sm:$0xff] }
 0x1ae   : > { %v1861_v56 = vpop.f32.mrf.mxu1 }
 0x1b0   : > { %v1862_v57 = vpop.f32.mrf.mxu1 }
 0x1b1   : > { %v1863_v60 = vadd.f32 %v1862_v57, %v1861_v56 }
 0x1b2   : > { %v1864_v61 = vpop.f32.mrf.mxu1 }
 0x1b3   : > { %v849_v62 = vpack.c.bf16 %v1863_v60, %v1860_v58 }
 0x1b4   : > { %v1865_v59 = vpop.f32.mrf.mxu1 }
 0x1b5   : > { %1994 = vmatprep.mubr.msk.bf16.mxu0 %vm880_vm2, %v849_v62  ;;  %v1866_v2 = vadd.f32 %v1865_v59, %v1864_v61 }
 0x1b6   : > { %v1867_v0 = vpop.f32.mrf.mxu1 }
 0x1b8   : > { %v1868_v1 = vpop.f32.mrf.mxu1 }
 0x1b9   : > { %v1869_v4 = vadd.f32 %v1868_v1, %v1867_v0 }
 0x1ba   : > { %v1870_v5 = vpop.f32.mrf.mxu1 }
 0x1bb   : > { %v850_v6 = vpack.c.bf16 %v1869_v4, %v1866_v2  ;;  %v2103_v4 = vld [vmem:[%s2789_s9 + $0x38] sm:$0xff]  }
 0x1bc   : > { %v1871_v8 = vpop.f32.mrf.mxu1 }
 0x1bd   : > { %1995 = vmatmul.mubr.msk.bf16.vlgmr.msra.gmra.mxu0 %vm880_vm2, %v850_v6  ;;  %v1872_v12 = vadd.f32 %v1871_v8, %v1870_v5  ;;  %v2104_v6 = vld [vmem:[%s2789_s9 + $0x70] sm:$0xff]  }
 0x1be   : > { %v1873_v10 = vpop.f32.mrf.mxu1  ;;  %2011 = vmatpush3.bf16.msra.mxu0 %v2097_v45  ;;  %v2102_v45 = vld [vmem:[%s2789_s9 + $0x78] sm:$0xff]  }
 0x1bf   : > { %2012 = vmatprep.subr.bf16.mxu0 %v2101_v7 }
 0x1c0   : > { %v1874_v11 = vpop.f32.mrf.mxu1 }
 0x1c1   : > { %v1875_v13 = vadd.f32 %v1874_v11, %v1873_v10  ;;  %v2106_v10 = vld [vmem:[%s2789_s9 + $0x68] sm:$0xff]  }
 0x1c2   : > { %v1876_v15 = vpop.f32.mrf.mxu1  ;;  %2013 = vmatpush3.bf16.msra.mxu0 %v2101_v7  ;;  %v2105_v7 = vld [vmem:[%s2789_s9 + $0x30] sm:$0xff]  }
 0x1c3   : > { %v851_v16 = vpack.c.bf16 %v1875_v13, %v1872_v12  ;;  %1926 = vmatprep.subr.bf16.mxu0 %v2102_v45  ;;  %v2107_v12 = vld [vmem:[%s2789_s9 + $0x28] sm:$0xff]  }
 0x1c4   : > { %v1877_v17 = vpop.f32.mrf.mxu1 }
 0x1c5   : > { %1998 = vmatprep.mubr.msk.bf16.mxu0 %vm880_vm2, %v851_v16  ;;  %v1878_v14 = vadd.f32 %v1877_v17, %v1876_v15  ;;  %v2108_v15 = vld [vmem:[%s2789_s9 + $0x60] sm:$0xff]  }
 0x1c6   : > { %v1879_v19 = vpop.f32.mrf.mxu1 }
 0x1c8   : > { %v1880_v20 = vpop.f32.mrf.mxu1 }
 0x1c9   : > { %v1881_v21 = vadd.f32 %v1880_v20, %v1879_v19 }
 0x1ca   : > { %v1882_v22 = vpop.f32.mrf.mxu1 }
 0x1cb   : > { %v852_v55 = vpack.c.bf16 %v1881_v21, %v1878_v14  ;;  %v2109_v21 = vld [vmem:[%s2789_s9 + $0x20] sm:$0xff]  }
 0x1cc   : > { %v1883_v63 = vpop.f32.mrf.mxu1 }
 0x1cd   : > { %1999 = vmatmul.mubr.msk.bf16.gmra.mxu0 %vm880_vm2, %v852_v55  ;;  %v1884_v25 = vadd.f32 %v1883_v63, %v1882_v22 }
 0x1ce   : > { %v1885_v23 = vpop.f32.mrf.mxu1 }
 0x1d0   : > { %v1886_v24 = vpop.f32.mrf.mxu1 }
 0x1d1   : > { %v1887_v26 = vadd.f32 %v1886_v24, %v1885_v23 }
 0x1d2   : > { %v1888_v27 = vpop.f32.mrf.mxu1 }
 0x1d3   : > { %v853_v28 = vpack.c.bf16 %v1887_v26, %v1884_v25 }
 0x1d4   : > { %v1889_v30 = vpop.f32.mrf.mxu1 }
 0x1d5   : > { %2002 = vmatprep.mubr.msk.bf16.mxu0 %vm880_vm2, %v853_v28  ;;  %v1890_v33 = vadd.f32 %v1889_v30, %v1888_v27 }
 0x1d6   : > { %v1891_v31 = vpop.f32.mrf.mxu1 }
 0x1d8   : > { %v1892_v32 = vpop.f32.mrf.mxu1 }
 0x1d9   : > { %v1893_v9 = vadd.f32 %v1892_v32, %v1891_v31 }
 0x1da   : > { %v1894_v34 = vpop.f32.mrf.mxu1 }
 0x1db   : > { %v854_v18 = vpack.c.bf16 %v1893_v9, %v1890_v33 }
 0x1dc   : > { %v1895_v35 = vpop.f32.mrf.mxu1 }
 0x1dd   : > { %2003 = vmatmul.mubr.msk.bf16.gmra.mxu0 %vm880_vm2, %v854_v18  ;;  %v1896_v38 = vadd.f32 %v1895_v35, %v1894_v34 }
 0x1de   : > { %v1897_v36 = vpop.f32.mrf.mxu1 }
 0x1e0   : > { %v1898_v37 = vpop.f32.mrf.mxu1 }
 0x1e1   : > { %v1899_v39 = vadd.f32 %v1898_v37, %v1897_v36 }
 0x1e2   : > { %v1900_v40 = vpop.f32.mrf.mxu1 }
 0x1e3   : > { %v855_v41 = vpack.c.bf16 %v1899_v39, %v1896_v38 }
 0x1e4   : > { %v1901_v52 = vpop.f32.mrf.mxu1 }
 0x1e5   : > { %2006 = vmatprep.mubr.msk.bf16.mxu0 %vm880_vm2, %v855_v41  ;;  %v1902_v29 = vadd.f32 %v1901_v52, %v1900_v40 }
 0x1e6   : > { %v1903_v42 = vpop.f32.mrf.mxu1 }
 0x1e8   : > { %v1904_v43 = vpop.f32.mrf.mxu1 }
 0x1e9   : > { %v1905_v44 = vadd.f32 %v1904_v43, %v1903_v42 }
 0x1eb   : > { %v856_v53 = vpack.c.bf16 %v1905_v44, %v1902_v29 }
 0x1ed   : > { %2007 = vmatmul.mubr.msk.bf16.gmra.mxu0 %vm880_vm2, %v856_v53 }
 0x27d   : > { %v1996_v46 = vpop.f32.mrf.mxu0 }
 0x27e   : > { %v948_v58 = vadd.f32 %v1996_v46, %v2484_v51 }
 0x27f   : > { %v939_v50 = vpop.f32.mrf.mxu0 }
 0x280   : > { %v940_v56 = vadd.f32 %v2484_v51, %v939_v50  ;;  %v1004_v1 = vmax.f32 %v948_v58, 0.0  ;;  %v2112_v58 = vld [vmem:[%s2789_s9 + $0x50] sm:$0xff]  }
 0x281   : > { %v1997_v54 = vpop.f32.mrf.mxu0 }
 0x282   : > { %v951_v57 = vadd.f32 %v1997_v54, %v2484_v51  ;;  %v1002_v59 = vmax.f32 %v940_v56, 0.0 }
 0x283   : > { %v942_v60 = vpop.f32.mrf.mxu0 }
 0x284   : > { %v943_v61 = vadd.f32 %v2484_v51, %v942_v60  ;;  %v1005_v62 = vmax.f32 %v951_v57, 0.0  ;;  %v2111_v57 = vld [vmem:[%s2789_s9 + $0x18] sm:$0xff]   ;;  %v2114_v60 = vld [vmem:[%s2789_s9 + $0x48] sm:$0xff]  }
 0x286   : > { %v1003_v0 = vmax.f32 %v943_v61, 0.0  ;;  %v1019_v5 = vpack.c.bf16 %v1005_v62, %v1004_v1  ;;  %v2115_v61 = vld [vmem:[%s2789_s9 + $0x8] sm:$0xff]   ;;  %v2116_v62 = vld [vmem:[%s2789_s9 + $0x40] sm:$0xff]  }
 0x288   : > { %v1018_v2 = vpack.c.bf16 %v1003_v0, %v1002_v59  ;;  %v2117_v59 = vld [vmem:[%s2789_s9] sm:$0xff]  }
 0x289   : > { %v1034_v0 = vld [vmem:[%s2787_s7] sm:$0x7] }
 0x28a   : > { %1801 = vmatmul.mubr.msk.bf16.vlgmr.msra.gmra.mxu1 %vm880_vm2, %v1018_v2  ;;  %2014 = vmatprep.mubr.msk.bf16.mxu0 %vm880_vm2, %v1018_v2  ;;  %v2577_v1 = vrot.slane %v1034_v0, %v2390_v49  ;;  %v1046_v2 = vsub.s32 2, %v2384_v47 }
 0x28b   : > { %2015 = vmatmul.mubr.msk.bf16.vlgmr.msra.gmra.mxu0 %vm880_vm2, %v1019_v5  ;;  %1149 = vmatprep.mubr.bf16.mxu1 %v2180_v3 }
 0x28c   : > { %1927 = vmatpush3.bf16.msra.mxu0 %v2103_v4 }
 0x28d   : > { %v2000_v8 = vpop.f32.mrf.mxu0  ;;  %1928 = vmatprep.subr.bf16.mxu0 %v2104_v6 }
 0x28e   : > { %v964_v19 = vadd.f32 %v2000_v8, %v2484_v51  ;;  %v2584_v8 = vrot.slane %v1034_v0, %v1046_v2 }
 0x28f   : > { %v955_v11 = vpop.f32.mrf.mxu0 }
 0x290   : > { %1929 = vmatpush3.bf16.msra.mxu0 %v2105_v7  ;;  %v956_v16 = vadd.f32 %v2484_v51, %v955_v11  ;;  %v1008_v23 = vmax.f32 %v964_v19, 0.0  ;;  %v2582_v7 = vrot.slane %v1034_v0, %v2387_v48 }
 0x291   : > { %v2001_v13 = vpop.f32.mrf.mxu0  ;;  %1930 = vmatprep.subr.bf16.mxu0 %v2106_v10  ;;  %v1317_v10 = vld [vmem:[%s2788_s8] sm:$0x3] }
 0x292   : > { %v967_v17 = vadd.f32 %v2001_v13, %v2484_v51  ;;  %1802 = vmatmul.mubr.msk.bf16.gmra.mxu1 %vm880_vm2, %v1019_v5  ;;  %v1006_v55 = vmax.f32 %v956_v16, 0.0  ;;  %v2595_v16 = vrot.slane %v1317_v10, %v2390_v49 }
 0x293   : > { %v958_v20 = vpop.f32.mrf.mxu0  ;;  %1159 = vmatprep.mubr.bf16.mxu1 %v2180_v3 }
 0x294   : > { %v959_v14 = vadd.f32 %v2484_v51, %v958_v20  ;;  %1931 = vmatpush3.bf16.msra.mxu0 %v2107_v12  ;;  %v1009_v22 = vmax.f32 %v967_v17, 0.0 }
 0x295   : > { %1932 = vmatprep.subr.bf16.mxu0 %v2108_v15 }
 0x296   : > { %v1007_v63 = vmax.f32 %v959_v14, 0.0  ;;  %v1021_v25 = vpack.c.bf16 %v1009_v22, %v1008_v23  ;;  %v2600_v14 = vrot.slane %v1317_v10, %v2387_v48 }
 0x298   : > { %v1020_v24 = vpack.c.bf16 %v1007_v63, %v1006_v55  ;;  %1933 = vmatpush3.bf16.msra.mxu0 %v2109_v21 }
 0x29a   : > { %1803 = vmatmul.mubr.msk.bf16.gmra.mxu1 %vm880_vm2, %v1020_v24  ;;  %2018 = vmatprep.mubr.msk.bf16.mxu0 %vm880_vm2, %v1020_v24 }
 0x29b   : > { %2019 = vmatmul.mubr.msk.bf16.gmra.mxu0 %vm880_vm2, %v1021_v25  ;;  %1169 = vmatprep.mubr.bf16.mxu1 %v2180_v3 }
 0x29d   : > { %v2004_v26 = vpop.f32.mrf.mxu0 }
 0x29e   : > { %v980_v32 = vadd.f32 %v2004_v26, %v2484_v51 }
 0x29f   : > { %v971_v27 = vpop.f32.mrf.mxu0 }
 0x2a0   : > { %v972_v30 = vadd.f32 %v2484_v51, %v971_v27  ;;  %v1012_v36 = vmax.f32 %v980_v32, 0.0 }
 0x2a1   : > { %v2005_v28 = vpop.f32.mrf.mxu0 }
 0x2a2   : > { %v983_v31 = vadd.f32 %v2005_v28, %v2484_v51  ;;  %1804 = vmatmul.mubr.msk.bf16.gmra.mxu1 %vm880_vm2, %v1021_v25  ;;  %v1010_v18 = vmax.f32 %v972_v30, 0.0 }
 0x2a3   : > { %v974_v33 = vpop.f32.mrf.mxu0  ;;  %1179 = vmatprep.mubr.bf16.mxu1 %v2180_v3 }
 0x2a4   : > { %v975_v9 = vadd.f32 %v2484_v51, %v974_v33  ;;  %v1013_v34 = vmax.f32 %v983_v31, 0.0 }
 0x2a6   : > { %v1011_v35 = vmax.f32 %v975_v9, 0.0  ;;  %v1023_v38 = vpack.c.bf16 %v1013_v34, %v1012_v36 }
 0x2a8   : > { %v1022_v37 = vpack.c.bf16 %v1011_v35, %v1010_v18 }
 0x2aa   : > { %1805 = vmatmul.mubr.msk.bf16.gmra.mxu1 %vm880_vm2, %v1022_v37  ;;  %2022 = vmatprep.mubr.msk.bf16.mxu0 %vm880_vm2, %v1022_v37 }
 0x2ab   : > { %2023 = vmatmul.mubr.msk.bf16.gmra.mxu0 %vm880_vm2, %v1023_v38  ;;  %1189 = vmatprep.mubr.bf16.mxu1 %v2180_v3 }
 0x2ad   : > { %v2008_v39 = vpop.f32.mrf.mxu0 }
 0x2ae   : > { %v996_v43 = vadd.f32 %v2008_v39, %v2484_v51 }
 0x2af   : > { %v987_v40 = vpop.f32.mrf.mxu0 }
 0x2b0   : > { %v988_v52 = vadd.f32 %v2484_v51, %v987_v40  ;;  %v1016_v50 = vmax.f32 %v996_v43, 0.0 }
 0x2b1   : > { %v2009_v41 = vpop.f32.mrf.mxu0 }
 0x2b2   : > { %v999_v42 = vadd.f32 %v2009_v41, %v2484_v51  ;;  %1806 = vmatmul.mubr.msk.bf16.gmra.mxu1 %vm880_vm2, %v1023_v38  ;;  %v1014_v45 = vmax.f32 %v988_v52, 0.0 }
 0x2b3   : > { %v990_v29 = vpop.f32.mrf.mxu0  ;;  %1199 = vmatprep.mubr.bf16.mxu1 %v2180_v3 }
 0x2b4   : > { %v991_v44 = vadd.f32 %v2484_v51, %v990_v29  ;;  %v1017_v53 = vmax.f32 %v999_v42, 0.0  ;;  %v2110_v51 = vld [vmem:[%s2789_s9 + $0x58] sm:$0xff]  }
 0x2b5   : > { %1934 = vmatprep.subr.bf16.mxu0 %v2110_v51 }
 0x2b6   : > { %v1015_v46 = vmax.f32 %v991_v44, 0.0  ;;  %v1025_v56 = vpack.c.bf16 %v1017_v53, %v1016_v50  ;;  %1935 = vmatpush3.bf16.msra.mxu0 %v2111_v57 }
 0x2b7   : > { %1936 = vmatprep.subr.bf16.mxu0 %v2112_v58 }
 0x2b8   : > { %v1024_v54 = vpack.c.bf16 %v1015_v46, %v1014_v45 }
 0x2ba   : > { %1807 = vmatmul.mubr.msk.bf16.gmra.mxu1 %vm880_vm2, %v1024_v54  ;;  %2026 = vmatprep.mubr.msk.bf16.mxu0 %vm880_vm2, %v1024_v54 }
 0x2bb   : > { %2027 = vmatmul.mubr.msk.bf16.gmra.mxu0 %vm880_vm2, %v1025_v56  ;;  %1209 = vmatprep.mubr.bf16.mxu1 %v2180_v3  ;;  %v2113_v3 = vld [vmem:[%s2789_s9 + $0x10] sm:$0xff]  }
 0x2bc   : > { %1937 = vmatpush3.bf16.msra.mxu0 %v2113_v3 }
 0x2bd   : > { %1938 = vmatprep.subr.bf16.mxu0 %v2114_v60 }
 0x2c0   : > { %1939 = vmatpush3.bf16.msra.mxu0 %v2115_v61 }
 0x2c1   : > { %1940 = vmatprep.subr.bf16.mxu0 %v2116_v62 }
 0x2c2   : > { %1808 = vmatmul.mubr.msk.bf16.gmra.mxu1 %vm880_vm2, %v1025_v56 }
 0x2c4   : > { %1941 = vmatpush3.bf16.msra.mxu0 %v2117_v59 }
 0x34a   : > { %v1141_v4 = vpop.f32.mrf.mxu1 }
 0x34b   : > { %v1142_v5 = vadd.f32 %v1141_v4, %v2577_v1  ;;  %v2016_v6 = vpop.f32.mrf.mxu0 }
 0x34c   : > { %v1143_v11 = vpop.f32.mrf.mxu1  ;;  %v1263_v20 = vadd.f32 %v2016_v6, %v2584_v8 }
 0x34d   : > { %1641 = vst [vmem:[%s2589_s25] sm:$0xff] %v1142_v5  ;;  %v1254_v47 = vpop.f32.mrf.mxu0  ;;  %v1144_v15 = vadd.f32 %v1143_v11, %v2582_v7 }
 0x34e   : > { %v1255_v12 = vadd.f32 %v1254_v47, %v2584_v8  ;;  %v1145_v13 = vpop.f32.mrf.mxu1  ;;  %v1334_v28 = vadd.f32 %v2600_v14, %v1263_v20 }
 0x34f   : > { %v1146_v17 = vadd.f32 %v1145_v13, %v2577_v1  ;;  %v2017_v19 = vpop.f32.mrf.mxu0  ;;  %v1329_v26 = vadd.f32 %v2595_v16, %v1144_v15 }
 0x350   : > { %v1266_v21 = vadd.f32 %v2017_v19, %v2584_v8  ;;  %v1147_v22 = vpop.f32.mrf.mxu1  ;;  %v1330_v23 = vadd.f32 %v2600_v14, %v1255_v12  ;;  %v1366_v38 = vmax.f32 %v1334_v28, 0.0 }
 0x351   : > { %1642 = vst [vmem:[%s2589_s25 + $0x10] sm:$0xff] %v1146_v17  ;;  %v1148_v55 = vadd.f32 %v1147_v22, %v2582_v7  ;;  %v1257_v63 = vpop.f32.mrf.mxu0  ;;  %v1361_v35 = vmax.f32 %v1329_v26, 0.0 }
 0x352   : > { %v1336_v49 = vadd.f32 %v2600_v14, %v1266_v21  ;;  %v1258_v24 = vadd.f32 %v1257_v63, %v2584_v8  ;;  %v1151_v25 = vpop.f32.mrf.mxu1  ;;  %v1362_v33 = vmax.f32 %v1330_v23, 0.0 }
 0x353   : > { %v1331_v48 = vadd.f32 %v2595_v16, %v1148_v55  ;;  %v1152_v27 = vadd.f32 %v1151_v25, %v2577_v1 }
 0x354   : > { %v1332_v30 = vadd.f32 %v2600_v14, %v1258_v24  ;;  %v1153_v31 = vpop.f32.mrf.mxu1  ;;  %v1368_v9 = vmax.f32 %v1336_v49, 0.0 }
 0x355   : > { %v1363_v32 = vmax.f32 %v1331_v48, 0.0  ;;  %1643 = vst [vmem:[%s2589_s25 + $0x20] sm:$0xff] %v1152_v27  ;;  %v1154_v36 = vadd.f32 %v1153_v31, %v2582_v7 }
 0x356   : > { %v1364_v34 = vmax.f32 %v1332_v30, 0.0  ;;  %v1155_v18 = vpop.f32.mrf.mxu1  ;;  %v1396_v43 = vpack.c.bf16 %v1368_v9, %v1366_v38 }
 0x357   : > { %v1156_v37 = vadd.f32 %v1155_v18, %v2577_v1  ;;  %v1393_v41 = vpack.c.bf16 %v1363_v32, %v1361_v35  ;;  %v1333_v29 = vadd.f32 %v2595_v16, %v1154_v36 }
 0x358   : > { %v1157_v39 = vpop.f32.mrf.mxu1  ;;  %v1394_v40 = vpack.c.bf16 %v1364_v34, %v1362_v33 }
 0x359   : > { %1644 = vst [vmem:[%s2589_s25 + $0x30] sm:$0xff] %v1156_v37  ;;  %v1158_v52 = vadd.f32 %v1157_v39, %v2582_v7  ;;  %v1365_v57 = vmax.f32 %v1333_v29, 0.0 }
 0x35a   : > { %v1161_v42 = vpop.f32.mrf.mxu1  ;;  %1576 = vmatprep.mubr.bf16.mxu0 %v1394_v40 }
 0x35b   : > { %v1335_v44 = vadd.f32 %v2595_v16, %v1158_v52  ;;  %v1162_v53 = vadd.f32 %v1161_v42, %v2577_v1  ;;  %v2020_v45 = vpop.f32.mrf.mxu0  ;;  %1577 = vmatmul.mubr.bf16.vlgmr.msra.gmra.mxu0 %v1393_v41 }
 0x35c   : > { %v1163_v46 = vpop.f32.mrf.mxu1  ;;  %1584 = vmatprep.mubr.bf16.mxu0 %v1396_v43  ;;  %v1279_v61 = vadd.f32 %v2020_v45, %v2584_v8 }
 0x35d   : > { %v1367_v50 = vmax.f32 %v1335_v44, 0.0  ;;  %1645 = vst [vmem:[%s2589_s25 + $0x40] sm:$0xff] %v1162_v53  ;;  %v1270_v54 = vpop.f32.mrf.mxu0  ;;  %v1164_v58 = vadd.f32 %v1163_v46, %v2582_v7 }
 0x35e   : > { %v1271_v56 = vadd.f32 %v1270_v54, %v2584_v8  ;;  %v1165_v51 = vpop.f32.mrf.mxu1  ;;  %v1342_v15 = vadd.f32 %v2600_v14, %v1279_v61 }
 0x35f   : > { %v1166_v3 = vadd.f32 %v1165_v51, %v2577_v1  ;;  %v2021_v60 = vpop.f32.mrf.mxu0  ;;  %v1395_v4 = vpack.c.bf16 %v1367_v50, %v1365_v57  ;;  %v1337_v47 = vadd.f32 %v2595_v16, %v1164_v58 }
 0x360   : > { %v1282_v62 = vadd.f32 %v2021_v60, %v2584_v8  ;;  %v1167_v59 = vpop.f32.mrf.mxu1  ;;  %v1338_v5 = vadd.f32 %v2600_v14, %v1271_v56  ;;  %v1374_v25 = vmax.f32 %v1342_v15, 0.0 }
 0x361   : > { %1646 = vst [vmem:[%s2589_s25 + $0x50] sm:$0xff] %v1166_v3  ;;  %v1168_v0 = vadd.f32 %v1167_v59, %v2582_v7  ;;  %v1273_v2 = vpop.f32.mrf.mxu0  ;;  %v1369_v23 = vmax.f32 %v1337_v47, 0.0 }
 0x362   : > { %v1344_v6 = vadd.f32 %v2600_v14, %v1282_v62  ;;  %v1274_v10 = vadd.f32 %v1273_v2, %v2584_v8  ;;  %v1171_v11 = vpop.f32.mrf.mxu1  ;;  %v1370_v21 = vmax.f32 %v1338_v5, 0.0 }
 0x363   : > { %v1339_v12 = vadd.f32 %v2595_v16, %v1168_v0  ;;  %v1172_v13 = vadd.f32 %v1171_v11, %v2577_v1  ;;  %1585 = vmatmul.mubr.bf16.gmra.mxu0 %v1395_v4 }
 0x364   : > { %v1340_v17 = vadd.f32 %v2600_v14, %v1274_v10  ;;  %v1173_v19 = vpop.f32.mrf.mxu1  ;;  %v1376_v22 = vmax.f32 %v1344_v6, 0.0 }
 0x365   : > { %v1371_v20 = vmax.f32 %v1339_v12, 0.0  ;;  %1647 = vst [vmem:[%s2589_s25 + $0x60] sm:$0xff] %v1172_v13  ;;  %v1174_v49 = vadd.f32 %v1173_v19, %v2582_v7 }
 0x366   : > { %v1372_v55 = vmax.f32 %v1340_v17, 0.0  ;;  %v1175_v63 = vpop.f32.mrf.mxu1  ;;  %v1400_v31 = vpack.c.bf16 %v1376_v22, %v1374_v25 }
 0x367   : > { %v1176_v24 = vadd.f32 %v1175_v63, %v2577_v1  ;;  %v1397_v28 = vpack.c.bf16 %v1371_v20, %v1369_v23  ;;  %v1341_v32 = vadd.f32 %v2595_v16, %v1174_v49 }
 0x368   : > { %v1177_v26 = vpop.f32.mrf.mxu1  ;;  %v1398_v48 = vpack.c.bf16 %v1372_v55, %v1370_v21 }
 0x369   : > { %1648 = vst [vmem:[%s2589_s25 + $0x70] sm:$0xff] %v1176_v24  ;;  %v1178_v27 = vadd.f32 %v1177_v26, %v2582_v7  ;;  %v1373_v39 = vmax.f32 %v1341_v32, 0.0 }
 0x36a   : > { %v1181_v30 = vpop.f32.mrf.mxu1  ;;  %1592 = vmatprep.mubr.bf16.mxu0 %v1398_v48 }
 0x36b   : > { %v1343_v33 = vadd.f32 %v2595_v16, %v1178_v27  ;;  %v1182_v9 = vadd.f32 %v1181_v30, %v2577_v1  ;;  %v2024_v34 = vpop.f32.mrf.mxu0  ;;  %1593 = vmatmul.mubr.bf16.gmra.mxu0 %v1397_v28 }
 0x36c   : > { %v1183_v18 = vpop.f32.mrf.mxu1  ;;  %1600 = vmatprep.mubr.bf16.mxu0 %v1400_v31  ;;  %v1295_v42 = vadd.f32 %v2024_v34, %v2584_v8 }
 0x36d   : > { %v1375_v35 = vmax.f32 %v1343_v33, 0.0  ;;  %1649 = vst [vmem:[%s2589_s25 + $0x80] sm:$0xff] %v1182_v9  ;;  %v1286_v36 = vpop.f32.mrf.mxu0  ;;  %v1184_v40 = vadd.f32 %v1183_v18, %v2582_v7 }
 0x36e   : > { %v1287_v37 = vadd.f32 %v1286_v36, %v2584_v8  ;;  %v1185_v38 = vpop.f32.mrf.mxu1  ;;  %v1350_v3 = vadd.f32 %v2600_v14, %v1295_v42 }
 0x36f   : > { %v1186_v41 = vadd.f32 %v1185_v38, %v2577_v1  ;;  %v2025_v52 = vpop.f32.mrf.mxu0  ;;  %v1399_v45 = vpack.c.bf16 %v1375_v35, %v1373_v39  ;;  %v1345_v51 = vadd.f32 %v2595_v16, %v1184_v40 }
 0x370   : > { %v1298_v43 = vadd.f32 %v2025_v52, %v2584_v8  ;;  %v1187_v29 = vpop.f32.mrf.mxu1  ;;  %v1346_v46 = vadd.f32 %v2600_v14, %v1287_v37  ;;  %v1382_v11 = vmax.f32 %v1350_v3, 0.0 }
 0x371   : > { %1650 = vst [vmem:[%s2589_s25 + $0x90] sm:$0xff] %v1186_v41  ;;  %v1188_v44 = vadd.f32 %v1187_v29, %v2582_v7  ;;  %v1289_v53 = vpop.f32.mrf.mxu0  ;;  %v1377_v5 = vmax.f32 %v1345_v51, 0.0 }
 0x372   : > { %v1352_v50 = vadd.f32 %v2600_v14, %v1298_v43  ;;  %v1290_v54 = vadd.f32 %v1289_v53, %v2584_v8  ;;  %v1191_v56 = vpop.f32.mrf.mxu1  ;;  %v1378_v59 = vmax.f32 %v1346_v46, 0.0 }
 0x373   : > { %v1347_v57 = vadd.f32 %v2595_v16, %v1188_v44  ;;  %v1192_v58 = vadd.f32 %v1191_v56, %v2577_v1  ;;  %1601 = vmatmul.mubr.bf16.gmra.mxu0 %v1399_v45 }
 0x374   : > { %v1348_v60 = vadd.f32 %v2600_v14, %v1290_v54  ;;  %v1193_v61 = vpop.f32.mrf.mxu1  ;;  %v1384_v0 = vmax.f32 %v1352_v50, 0.0 }
 0x375   : > { %v1379_v62 = vmax.f32 %v1347_v57, 0.0  ;;  %1651 = vst [vmem:[%s2589_s25 + $0xa0] sm:$0xff] %v1192_v58  ;;  %v1194_v6 = vadd.f32 %v1193_v61, %v2582_v7 }
 0x376   : > { %v1380_v2 = vmax.f32 %v1348_v60, 0.0  ;;  %v1195_v4 = vpop.f32.mrf.mxu1  ;;  %v1404_v19 = vpack.c.bf16 %v1384_v0, %v1382_v11 }
 0x377   : > { %v1196_v10 = vadd.f32 %v1195_v4, %v2577_v1  ;;  %v1401_v15 = vpack.c.bf16 %v1379_v62, %v1377_v5  ;;  %v1349_v20 = vadd.f32 %v2595_v16, %v1194_v6 }
 0x378   : > { %v1197_v47 = vpop.f32.mrf.mxu1  ;;  %v1402_v12 = vpack.c.bf16 %v1380_v2, %v1378_v59 }
 0x379   : > { %1652 = vst [vmem:[%s2589_s25 + $0xb0] sm:$0xff] %v1196_v10  ;;  %v1198_v13 = vadd.f32 %v1197_v47, %v2582_v7  ;;  %v1381_v26 = vmax.f32 %v1349_v20, 0.0 }
 0x37a   : > { %v1201_v17 = vpop.f32.mrf.mxu1  ;;  %1608 = vmatprep.mubr.bf16.mxu0 %v1402_v12 }
 0x37b   : > { %v1351_v21 = vadd.f32 %v2595_v16, %v1198_v13  ;;  %v1202_v22 = vadd.f32 %v1201_v17, %v2577_v1  ;;  %v2028_v55 = vpop.f32.mrf.mxu0  ;;  %1609 = vmatmul.mubr.bf16.gmra.mxu0 %v1401_v15 }
 0x37c   : > { %v1203_v63 = vpop.f32.mrf.mxu1  ;;  %1616 = vmatprep.mubr.bf16.mxu0 %v1404_v19  ;;  %v1311_v30 = vadd.f32 %v2028_v55, %v2584_v8 }
 0x37d   : > { %v1383_v23 = vmax.f32 %v1351_v21, 0.0  ;;  %1653 = vst [vmem:[%s2589_s25 + $0xc0] sm:$0xff] %v1202_v22  ;;  %v1302_v49 = vpop.f32.mrf.mxu0  ;;  %v1204_v48 = vadd.f32 %v1203_v63, %v2582_v7 }
 0x37e   : > { %v1303_v24 = vadd.f32 %v1302_v49, %v2584_v8  ;;  %v1205_v25 = vpop.f32.mrf.mxu1  ;;  %v1358_v41 = vadd.f32 %v2600_v14, %v1311_v30 }
 0x37f   : > { %v1206_v27 = vadd.f32 %v1205_v25, %v2577_v1  ;;  %v2029_v28 = vpop.f32.mrf.mxu0  ;;  %v1403_v34 = vpack.c.bf16 %v1383_v23, %v1381_v26  ;;  %v1353_v38 = vadd.f32 %v2595_v16, %v1204_v48 }
 0x380   : > { %v1314_v31 = vadd.f32 %v2029_v28, %v2584_v8  ;;  %v1207_v32 = vpop.f32.mrf.mxu1  ;;  %v1354_v18 = vadd.f32 %v2600_v14, %v1303_v24  ;;  %v1390_v54 = vmax.f32 %v1358_v41, 0.0 }
 0x381   : > { %1654 = vst [vmem:[%s2589_s25 + $0xd0] sm:$0xff] %v1206_v27  ;;  %v1208_v33 = vadd.f32 %v1207_v32, %v2582_v7  ;;  %v1305_v9 = vpop.f32.mrf.mxu0  ;;  %v1385_v45 = vmax.f32 %v1353_v38, 0.0 }
 0x382   : > { %v1360_v35 = vadd.f32 %v2600_v14, %v1314_v31  ;;  %v1306_v36 = vadd.f32 %v1305_v9, %v2584_v8  ;;  %v1211_v37 = vpop.f32.mrf.mxu1  ;;  %v1386_v29 = vmax.f32 %v1354_v18, 0.0 }
 0x383   : > { %v1355_v39 = vadd.f32 %v2595_v16, %v1208_v33  ;;  %v1212_v40 = vadd.f32 %v1211_v37, %v2577_v1  ;;  %1617 = vmatmul.mubr.bf16.gmra.mxu0 %v1403_v34 }
 0x384   : > { %v1356_v52 = vadd.f32 %v2600_v14, %v1306_v36  ;;  %v1213_v42 = vpop.f32.mrf.mxu1  ;;  %v1392_v44 = vmax.f32 %v1360_v35, 0.0 }
 0x385   : > { %v1387_v43 = vmax.f32 %v1355_v39, 0.0  ;;  %1655 = vst [vmem:[%s2589_s25 + $0xe0] sm:$0xff] %v1212_v40  ;;  %v1214_v46 = vadd.f32 %v1213_v42, %v2582_v7 }
 0x386   : > { %v1388_v53 = vmax.f32 %v1356_v52, 0.0  ;;  %v1215_v8 = vpop.f32.mrf.mxu1  ;;  %v1408_v14 = vpack.c.bf16 %v1392_v44, %v1390_v54 }
 0x387   : > { %v1216_v50 = vadd.f32 %v1215_v8, %v2577_v1  ;;  %v1405_v58 = vpack.c.bf16 %v1387_v43, %v1385_v45  ;;  %v1357_v3 = vadd.f32 %v2595_v16, %v1214_v46 }
 0x388   : > { %v1217_v56 = vpop.f32.mrf.mxu1  ;;  %v1406_v51 = vpack.c.bf16 %v1388_v53, %v1386_v29 }
 0x389   : > { %1656 = vst [vmem:[%s2589_s25 + $0xf0] sm:$0xff] %v1216_v50  ;;  %v1218_v57 = vadd.f32 %v1217_v56, %v2582_v7  ;;  %v1389_v62 = vmax.f32 %v1357_v3, 0.0  ;;  %v2695_v7 = vld [vmem:[%s2790_s10] ss:$0 sm:$0xff] }
 0x38a   : > { %1624 = vmatprep.mubr.bf16.mxu0 %v1406_v51 }
 0x38b   : > { %v1359_v60 = vadd.f32 %v2595_v16, %v1218_v57  ;;  %1625 = vmatmul.mubr.bf16.gmra.mxu0 %v1405_v58 }
 0x38c   : > { %1632 = vmatprep.mubr.bf16.mxu0 %v1408_v14 }
 0x38d   : > { %v1391_v61 = vmax.f32 %v1359_v60, 0.0 }
 0x38f   : > { %v1407_v1 = vpack.c.bf16 %v1391_v61, %v1389_v62 }
 0x393   : > { %1633 = vmatmul.mubr.bf16.gmra.mxu0 %v1407_v1 }
 0x41b   : > { %v1942_v59 = vpop.f32.mrf.mxu0 }
 0x41d   : > { %v1943_v0 = vpop.f32.mrf.mxu0 }
 0x41e   : > { %v1944_v2 = vadd.f32 %v1943_v0, %v1942_v59 }
 0x41f   : > { %v1945_v4 = vpop.f32.mrf.mxu0 }
 0x420   : > { %v1579_v5 = vadd.f32 %v1944_v2, %v2695_v7 }
 0x421   : > { %v1946_v16 = vpop.f32.mrf.mxu0 }
 0x422   : > { %1657 = vst [vmem:[%s2589_s25 + $0x8] sm:$0xff] %v1579_v5  ;;  %v1947_v6 = vadd.f32 %v1946_v16, %v1945_v4 }
 0x423   : > { %v1948_v10 = vpop.f32.mrf.mxu0 }
 0x424   : > { %v1582_v11 = vadd.f32 %v1947_v6, %v2695_v7 }
 0x425   : > { %v1949_v47 = vpop.f32.mrf.mxu0 }
 0x426   : > { %1658 = vst [vmem:[%s2589_s25 + $0x18] sm:$0xff] %v1582_v11  ;;  %v1950_v12 = vadd.f32 %v1949_v47, %v1948_v10 }
 0x427   : > { %v1951_v13 = vpop.f32.mrf.mxu0 }
 0x428   : > { %v1587_v15 = vadd.f32 %v1950_v12, %v2695_v7 }
 0x429   : > { %v1952_v17 = vpop.f32.mrf.mxu0 }
 0x42a   : > { %1659 = vst [vmem:[%s2589_s25 + $0x28] sm:$0xff] %v1587_v15  ;;  %v1953_v19 = vadd.f32 %v1952_v17, %v1951_v13 }
 0x42b   : > { %v1954_v20 = vpop.f32.mrf.mxu0 }
 0x42c   : > { %v1590_v21 = vadd.f32 %v1953_v19, %v2695_v7 }
 0x42d   : > { %v1955_v22 = vpop.f32.mrf.mxu0 }
 0x42e   : > { %1660 = vst [vmem:[%s2589_s25 + $0x38] sm:$0xff] %v1590_v21  ;;  %v1956_v55 = vadd.f32 %v1955_v22, %v1954_v20 }
 0x42f   : > { %v1957_v63 = vpop.f32.mrf.mxu0 }
 0x430   : > { %v1595_v23 = vadd.f32 %v1956_v55, %v2695_v7 }
 0x431   : > { %v1958_v49 = vpop.f32.mrf.mxu0 }
 0x432   : > { %1661 = vst [vmem:[%s2589_s25 + $0x48] sm:$0xff] %v1595_v23  ;;  %v1959_v24 = vadd.f32 %v1958_v49, %v1957_v63 }
 0x433   : > { %v1960_v25 = vpop.f32.mrf.mxu0 }
 0x434   : > { %v1598_v26 = vadd.f32 %v1959_v24, %v2695_v7 }
 0x435   : > { %v1961_v48 = vpop.f32.mrf.mxu0 }
 0x436   : > { %1662 = vst [vmem:[%s2589_s25 + $0x58] sm:$0xff] %v1598_v26  ;;  %v1962_v27 = vadd.f32 %v1961_v48, %v1960_v25 }
 0x437   : > { %v1963_v28 = vpop.f32.mrf.mxu0 }
 0x438   : > { %v1603_v30 = vadd.f32 %v1962_v27, %v2695_v7 }
 0x439   : > { %v1964_v31 = vpop.f32.mrf.mxu0 }
 0x43a   : > { %1663 = vst [vmem:[%s2589_s25 + $0x68] sm:$0xff] %v1603_v30  ;;  %v1965_v32 = vadd.f32 %v1964_v31, %v1963_v28 }
 0x43b   : > { %v1966_v33 = vpop.f32.mrf.mxu0 }
 0x43c   : > { %v1606_v9 = vadd.f32 %v1965_v32, %v2695_v7 }
 0x43d   : > { %v1967_v34 = vpop.f32.mrf.mxu0 }
 0x43e   : > { %1664 = vst [vmem:[%s2589_s25 + $0x78] sm:$0xff] %v1606_v9  ;;  %v1968_v18 = vadd.f32 %v1967_v34, %v1966_v33 }
 0x43f   : > { %v1969_v35 = vpop.f32.mrf.mxu0 }
 0x440   : > { %v1611_v36 = vadd.f32 %v1968_v18, %v2695_v7 }
 0x441   : > { %v1970_v37 = vpop.f32.mrf.mxu0 }
 0x442   : > { %1665 = vst [vmem:[%s2589_s25 + $0x88] sm:$0xff] %v1611_v36  ;;  %v1971_v38 = vadd.f32 %v1970_v37, %v1969_v35 }
 0x443   : > { %v1972_v39 = vpop.f32.mrf.mxu0 }
 0x444   : > { %v1614_v40 = vadd.f32 %v1971_v38, %v2695_v7 }
 0x445   : > { %v1973_v41 = vpop.f32.mrf.mxu0 }
 0x446   : > { %1666 = vst [vmem:[%s2589_s25 + $0x98] sm:$0xff] %v1614_v40  ;;  %v1974_v52 = vadd.f32 %v1973_v41, %v1972_v39 }
 0x447   : > { %v1975_v42 = vpop.f32.mrf.mxu0 }
 0x448   : > { %v1619_v43 = vadd.f32 %v1974_v52, %v2695_v7 }
 0x449   : > { %v1976_v29 = vpop.f32.mrf.mxu0 }
 0x44a   : > { %1667 = vst [vmem:[%s2589_s25 + $0xa8] sm:$0xff] %v1619_v43  ;;  %v1977_v44 = vadd.f32 %v1976_v29, %v1975_v42 }
 0x44b   : > { %v1978_v53 = vpop.f32.mrf.mxu0 }
 0x44c   : > { %v1622_v8 = vadd.f32 %v1977_v44, %v2695_v7 }
 0x44d   : > { %v1979_v45 = vpop.f32.mrf.mxu0 }
 0x44e   : > { %1668 = vst [vmem:[%s2589_s25 + $0xb8] sm:$0xff] %v1622_v8  ;;  %v1980_v46 = vadd.f32 %v1979_v45, %v1978_v53 }
 0x44f   : > { %v1981_v50 = vpop.f32.mrf.mxu0 }
 0x450   : > { %v1627_v54 = vadd.f32 %v1980_v46, %v2695_v7 }
 0x451   : > { %v1982_v56 = vpop.f32.mrf.mxu0 }
 0x452   : > { %1669 = vst [vmem:[%s2589_s25 + $0xc8] sm:$0xff] %v1627_v54  ;;  %v1983_v51 = vadd.f32 %v1982_v56, %v1981_v50 }
 0x453   : > { %v1984_v57 = vpop.f32.mrf.mxu0 }
 0x454   : > { %v1630_v58 = vadd.f32 %v1983_v51, %v2695_v7 }
 0x455   : > { %v1985_v14 = vpop.f32.mrf.mxu0 }
 0x456   : > { %1670 = vst [vmem:[%s2589_s25 + $0xd8] sm:$0xff] %v1630_v58  ;;  %v1986_v3 = vadd.f32 %v1985_v14, %v1984_v57 }
 0x457   : > { %v1987_v60 = vpop.f32.mrf.mxu0 }
 0x458   : > { %v1635_v61 = vadd.f32 %v1986_v3, %v2695_v7 }
 0x459   : > { %v1988_v62 = vpop.f32.mrf.mxu0 }
 0x45a   : > { %1671 = vst [vmem:[%s2589_s25 + $0xe8] sm:$0xff] %v1635_v61  ;;  %v1989_v1 = vadd.f32 %v1988_v62, %v1987_v60 }
 0x45c   : > { %v1638_v59 = vadd.f32 %v1989_v1, %v2695_v7 }
 0x45e   : > { %1672 = vst [vmem:[%s2589_s25 + $0xf8] sm:$0xff] %v1638_v59 }
 0x45f   : > { %2131 = shalt.err (!%p2128_p3)
}
 0x460   : > { %s2132_s24 = scalar_lea.hbm %s2732_s16, 4096  ;;  %s2136_s15 = scalar_lea.hbm %s2791_s11, 8192 }
 0x461   : > { %p2133_p4 = scmp.ne.s32.totalorder %s2732_s16, %s2132_s24  ;;  %p2137_p9 = scmp.lt.s32.totalorder %s2732_s16, %s2791_s11 }
 0x462   : > { %p2138_p10 = scmp.lt.s32.totalorder %s2136_s15, %s2132_s24 }
 0x463   : > { %p2134_p7 = pnand %p2133_p4, %p2282_p5 }
 0x464   : > { %p2139_p11 = por %p2138_p10, %p2137_p9 }
 0x465   : > { %p2135_p8 = pneg %p2134_p7 }
 0x467   : > { %p2140_p12 = pnand %p2139_p11, %p2135_p8 }
 0x469   : > { %2143 = shalt.err (!%p2140_p12)
}
 0x46a   : > { %s2182_s21 = smov 256   ;;  %s2183_s30 = smov 16  }
 0x46b   : > { %2032 = dma.vmem_to_hbm [thread:$0]  (%p2282_p5), %s2734_s13, 4096, %s2732_s16, %s2740_s22, %s2182_s21, %s2182_s21, %s2183_s30  }
 0x46c PF: > { %p2038_p13 = scmp.ge.s32.totalorder %s2178_s20, 2  ;;  %s1703_s12 = sand.u32 1, %s2166_s17  }
 0x46d   : > { %s1704_s0 = scalar_lea.sflag [#allocation3], %s1703_s12 }
 0x46e   : > { %p2035_p0 = pnand %p2038_p13, %p2286_p6 }
 0x470   : > { %p2036_p1 = pneg %p2035_p0 }
 0x472   : > { %2161 = dma.done.wait (%p2036_p1), %s1704_s0, 4096  }
 0x473   : > { %2163 = vsyncadd (%p2036_p1), %s1704_s0, 4294963200  ;;  %p21_p2 = scmp.ge.s32.totalorder %s2269_s23, 4   ;;  %s2796_s17 = smov %s2170_s18 }
 0x474   : > { %s2797_s18 = smov %s2174_s19  ;;  %s2798_s19 = smov %s2280_s26 }
 0x475   : > { %s2799_s20 = smov %s2269_s23  ;;  %23 = sbr.rel (!%p21_p2) target bundleno = 5 (0x5), region = 99 }
 0x47a   :  { %1709 = vsyncpa [#allocation3], 1 }
 0x47b   :  { %1711 = vsyncpa [#allocation3 + $0x1], 1 }

</bundles_post_ra>
